<compile_context>
chip_gen: v6e
topology: v6e:2x2x1
jax: 0.10.0
libtpu: 0.0.40
codegen_flags: <defaults>
</compile_context>

<pallas_src>
import functools
import math

import jax
import jax.numpy as jnp
from jax.experimental import pallas as pl
from jax.experimental.pallas import tpu as pltpu

LN_EPS = 1e-5
NEG_INF = -1e30


def _round_up(x: int, m: int) -> int:
    return (x + m - 1) // m * m


def _attention_block_kernel(
    # scalar prefetch
    time_len_ref,                       # SMEM (B,) int32
    # inputs
    x_kv_ref,                           # (Sp, Ep) bf16  (batch squeezed) — K/V projection path
    x_q_ref,                            # (tq, Ep) f32   (batch squeezed) — Q / residual path
    wq_ref, bq_ref,                     # (Ep, HD) bf16, (1, HD) f32
    wk_ref, bk_ref,
    wv_ref, bv_ref,
    wo_ref, bo_ref,                     # (HD, Ep) bf16, (1, Ep) f32
    ln1_g_ref, ln1_b_ref,               # (1, Ep) f32
    ff_w1_ref, ff_b1_ref,
    ff_w2_ref, ff_b2_ref,
    ff_w3_ref, ff_b3_ref,
    ln2_g_ref, ln2_b_ref,
    # outputs
    o_ref,                              # (tq, Ep) f32
    # scratch (persists across the query-tile grid axis)
    k_scratch, v_scratch,               # (Sp, HD) bf16, lane-packed heads (Dhh each)
    *, num_heads: int, dhh: int, e_true: int, dh_true: int, compute_dtype,
):
    b = pl.program_id(0)
    qt = pl.program_id(1)
    tq, Ep = o_ref.shape
    Sp, HD = k_scratch.shape

    # ---- K/V projection for the whole sequence, once per batch row (lane-dense stores) ----
    @pl.when(qt == 0)
    def _():
        xk = x_kv_ref[...]                                               # (Sp, Ep) bf16
        k = jnp.dot(xk, wk_ref[...], preferred_element_type=jnp.float32) + bk_ref[...]
        v = jnp.dot(xk, wv_ref[...], preferred_element_type=jnp.float32) + bv_ref[...]
        k_scratch[...] = k.astype(compute_dtype)
        v_scratch[...] = v.astype(compute_dtype)

    # ---- query tile (residual path stays f32) ----
    x = x_q_ref[...]                                                     # (tq, Ep) f32
    q = jnp.dot(x.astype(compute_dtype), wq_ref[...],
                preferred_element_type=jnp.float32) + bq_ref[...]        # (tq, HD) f32
    # scale in f32 on the accumulator (matches the reference bf16-weight rounding exactly)
    q = (q * (1.0 / math.sqrt(dh_true))).astype(compute_dtype)

    # ---- causal + key-padding mask built in-kernel from the scalar-prefetched time_len ----
    tl = time_len_ref[b]
    row0 = qt * tq
    qpos = row0 + jax.lax.broadcasted_iota(jnp.int32, (tq, Sp), 0)
    kpos = jax.lax.broadcasted_iota(jnp.int32, (tq, Sp), 1)
    valid = (kpos <= qpos) & (kpos <= tl)                                # True = attend

    # ---- attention, one lane-dense head at a time (static unrolled loop) ----
    ctx_heads = []
    for head in range(num_heads):
        lo = head * dhh                                                  # 128-aligned lane offset
        qh = q[:, lo:lo + dhh]                                           # (tq, Dhh) bf16
        kh = k_scratch[:, lo:lo + dhh]                                   # (Sp, Dhh) bf16
        vh = v_scratch[:, lo:lo + dhh]                                   # (Sp, Dhh) bf16
        s = jax.lax.dot_general(qh, kh, (((1,), (1,)), ((), ())),
                                preferred_element_type=jnp.float32)      # (tq, Sp) f32
        s = jnp.where(valid, s, jnp.float32(NEG_INF))
        m = jnp.max(s, axis=-1, keepdims=True)
        p = jnp.exp(s - m)
        p = p / jnp.sum(p, axis=-1, keepdims=True)                       # exact normalization
        ctx_heads.append(
            jnp.dot(p.astype(compute_dtype), vh,
                    preferred_element_type=jnp.float32).astype(compute_dtype))
    ctx = jnp.concatenate(ctx_heads, axis=-1)                            # (tq, HD) bf16

    # ---- single output projection: one MXU pass, contraction depth HD = H*Dhh ----
    attn_out = jnp.dot(ctx, wo_ref[...],
                       preferred_element_type=jnp.float32) + bo_ref[...]  # (tq, Ep) f32

    inv_e = 1.0 / float(e_true)

    def layer_norm(z, g, beta):
        # Padded lanes of z are exactly zero by construction -> normalize over true E.
        mu = jnp.sum(z, axis=-1, keepdims=True) * inv_e
        var = jnp.maximum(jnp.sum(z * z, axis=-1, keepdims=True) * inv_e - mu * mu, 0.0)
        return (z - mu) * jax.lax.rsqrt(var + LN_EPS) * g + beta

    y = layer_norm(x + attn_out, ln1_g_ref[...], ln1_b_ref[...])

    # ---- feed forward (3x Linear, ReLU between); dropout = identity at inference ----
    h1 = jnp.maximum(
        jnp.dot(y.astype(compute_dtype), ff_w1_ref[...],
                preferred_element_type=jnp.float32) + ff_b1_ref[...], 0.0)
    h2 = jnp.maximum(
        jnp.dot(h1.astype(compute_dtype), ff_w2_ref[...],
                preferred_element_type=jnp.float32) + ff_b2_ref[...], 0.0)
    h3 = jnp.dot(h2.astype(compute_dtype), ff_w3_ref[...],
                 preferred_element_type=jnp.float32) + ff_b3_ref[...]

    o_ref[...] = layer_norm(h3, ln2_g_ref[...], ln2_b_ref[...])


def _prepare_inputs(x, params, num_heads, E, Ep, Sp, Dh, Dhh, compute_dtype):
    """Zero-pad x/weights to lane-dense shapes (Ep mult of 128, per-head dim Dhh mult of 128)
    and pre-cast matmul weights to the compute dtype (biases / LN params stay f32)."""
    B, S, _ = x.shape
    H = num_heads
    HD = H * Dhh
    pe, ps = Ep - E, Sp - S

    x_f32 = jnp.pad(x.astype(jnp.float32), ((0, 0), (0, ps), (0, pe)))
    x_bf = x_f32.astype(compute_dtype)

    def head_cols(w):              # (E, E) -> (Ep, HD): head-aware column padding Dh -> Dhh
        w = w.reshape(E, H, Dh)
        w = jnp.pad(w, ((0, pe), (0, 0), (0, Dhh - Dh)))
        return w.reshape(Ep, HD)

    def head_bias(bias):           # (1, E) -> (1, HD)
        bias = bias.reshape(H, Dh)
        bias = jnp.pad(bias, ((0, 0), (0, Dhh - Dh)))
        return bias.reshape(1, HD)

    def pad_mat(w):                # (E, E) -> (Ep, Ep)
        return jnp.pad(w, ((0, pe), (0, pe)))

    def pad_vec(v):                # (1, E) -> (1, Ep)
        return jnp.pad(v, ((0, 0), (0, pe)))

    wq, wk, wv = (params["in_w"][:, i * E:(i + 1) * E] for i in range(3))
    bq, bk, bv = (params["in_b"][:, i * E:(i + 1) * E] for i in range(3))

    # out_w rows are head-major ctx features: (E, E) -> (HD, Ep)
    wo = params["out_w"].reshape(H, Dh, E)
    wo = jnp.pad(wo, ((0, 0), (0, Dhh - Dh), (0, pe))).reshape(HD, Ep)

    weights = [
        head_cols(wq).astype(compute_dtype), head_bias(bq),
        head_cols(wk).astype(compute_dtype), head_bias(bk),
        head_cols(wv).astype(compute_dtype), head_bias(bv),
        wo.astype(compute_dtype), pad_vec(params["out_b"]),
        pad_vec(params["ln1_g"]), pad_vec(params["ln1_b"]),
        pad_mat(params["ff_w1"]).astype(compute_dtype), pad_vec(params["ff_b1"]),
        pad_mat(params["ff_w2"]).astype(compute_dtype), pad_vec(params["ff_b2"]),
        pad_mat(params["ff_w3"]).astype(compute_dtype), pad_vec(params["ff_b3"]),
        pad_vec(params["ln2_g"]), pad_vec(params["ln2_b"]),
    ]
    return x_bf, x_f32, weights


def attention_block(x, time_len, params, num_heads, *, tq_max=256,
                    compute_dtype=jnp.bfloat16, interpret=False):
    B, S, E = x.shape
    assert E % num_heads == 0
    Dh = E // num_heads
    Dhh = _round_up(Dh, 128)                     # lane-dense per-head dim
    HD = num_heads * Dhh
    Ep = _round_up(E, 128)                       # lane-dense feature dim
    tq = min(tq_max, _round_up(S, 16))           # query tile (multiple of 16 for bf16 packing)
    Sp = _round_up(S, tq)                        # padded sequence length
    num_q_tiles = Sp // tq

    x_bf, x_f32, weights = _prepare_inputs(
        x, params, num_heads, E, Ep, Sp, Dh, Dhh, compute_dtype)

    def kv_map(b, qt, tl_ref):
        return (b, 0, 0)                         # full sequence per batch row (fetched once per b)

    def q_map(b, qt, tl_ref):
        return (b, qt, 0)

    def const_map(nd):
        return lambda b, qt, tl_ref, _n=nd: (0,) * _n

    # Constant-index weight blocks: single-buffered (no point double-buffering them).
    w_specs = [pl.BlockSpec(w.shape, const_map(w.ndim), pipeline_mode=pl.Buffered(1))
               for w in weights]

    in_specs = [
        pl.BlockSpec((None, Sp, Ep), kv_map),    # bf16 full-seq block (K/V projection only)
        pl.BlockSpec((None, tq, Ep), q_map),     # f32 per-tile block (Q / residual path)
    ] + w_specs

    kernel = functools.partial(
        _attention_block_kernel,
        num_heads=num_heads, dhh=Dhh, e_true=E, dh_true=Dh, compute_dtype=compute_dtype)

    out_p = pl.pallas_call(
        kernel,
        out_shape=jax.ShapeDtypeStruct((B, Sp, Ep), jnp.float32),
        grid_spec=pltpu.PrefetchScalarGridSpec(
            num_scalar_prefetch=1,               # time_len -> SMEM, mask built in-kernel
            grid=(B, num_q_tiles),
            in_specs=in_specs,
            out_specs=pl.BlockSpec((None, tq, Ep), q_map),
            scratch_shapes=[
                pltpu.VMEM((Sp, HD), compute_dtype),   # K, heads lane-packed (Dhh each)
                pltpu.VMEM((Sp, HD), compute_dtype),   # V
            ],
        ),
        compiler_params=pltpu.CompilerParams(
            dimension_semantics=("parallel", "arbitrary"),
            vmem_limit_bytes=48 * 1024 * 1024,   # leaves headroom on v7x's 64 MiB VMEM
        ),
        interpret=interpret,
    )(time_len.astype(jnp.int32), x_bf, x_f32, *weights)

    return out_p[:, :S, :E]


def init_params(key, input_dim):
    E = input_dim
    ks = jax.random.split(key, 8)
    std = 1.0 / jnp.sqrt(jnp.float32(E))

    def w(k, shape):
        return (jax.random.normal(k, shape, jnp.float32) * std).astype(jnp.float32)

    return {
        # stored as (in, out): kernel computes x @ W  (PyTorch stores (out, in), does x @ W.T)
        "in_w": w(ks[0], (E, 3 * E)),
        "in_b": jnp.zeros((1, 3 * E), jnp.float32),
        "out_w": w(ks[1], (E, E)),
        "out_b": jnp.zeros((1, E), jnp.float32),
        "ln1_g": jnp.ones((1, E), jnp.float32),
        "ln1_b": jnp.zeros((1, E), jnp.float32),
        "ff_w1": w(ks[2], (E, E)),
        "ff_b1": (jax.random.normal(ks[3], (1, E), jnp.float32) * 0.01),
        "ff_w2": w(ks[4], (E, E)),
        "ff_b2": (jax.random.normal(ks[5], (1, E), jnp.float32) * 0.01),
        "ff_w3": w(ks[6], (E, E)),
        "ff_b3": (jax.random.normal(ks[7], (1, E), jnp.float32) * 0.01),
        "ln2_g": jnp.ones((1, E), jnp.float32),
        "ln2_b": jnp.zeros((1, E), jnp.float32),
    }


def reference(x, time_len, params, num_heads, matmul_dtype=jnp.float32):
    """Pure-JAX reference. matmul_dtype=bfloat16 mirrors the kernel's MXU precision."""
    B, S, E = x.shape
    H = num_heads
    Dh = E // H
    prec = "highest" if matmul_dtype == jnp.float32 else None

    def mm(a, w):
        return jnp.matmul(a.astype(matmul_dtype), w.astype(matmul_dtype),
                          precision=prec, preferred_element_type=jnp.float32)

    qkv = mm(x, params["in_w"]) + params["in_b"][None]
    q, k, v = qkv[..., :E], qkv[..., E:2 * E], qkv[..., 2 * E:]
    q = q.reshape(B, S, H, Dh).transpose(0, 2, 1, 3) * (1.0 / math.sqrt(Dh))
    k = k.reshape(B, S, H, Dh).transpose(0, 2, 1, 3)
    v = v.reshape(B, S, H, Dh).transpose(0, 2, 1, 3)

    s = jnp.einsum("bhqd,bhkd->bhqk", q.astype(matmul_dtype), k.astype(matmul_dtype),
                   precision=prec, preferred_element_type=jnp.float32)
    qpos = jnp.arange(S)[:, None]
    kpos = jnp.arange(S)[None, :]
    valid = (kpos <= qpos)[None, :, :] & (kpos[None, :, :] <= time_len[:, None, None])
    s = jnp.where(valid[:, None], s, jnp.float32(NEG_INF))
    a = jax.nn.softmax(s, axis=-1)
    ctx = jnp.einsum("bhqk,bhkd->bhqd", a.astype(matmul_dtype), v.astype(matmul_dtype),
                     precision=prec, preferred_element_type=jnp.float32)
    ctx = ctx.transpose(0, 2, 1, 3).reshape(B, S, E)
    attn_out = mm(ctx, params["out_w"]) + params["out_b"][None]

    def ln(z, g, b):
        mu = jnp.mean(z, -1, keepdims=True)
        var = jnp.mean((z - mu) ** 2, -1, keepdims=True)
        return (z - mu) * jax.lax.rsqrt(var + LN_EPS) * g[None] + b[None]

    y = ln(x + attn_out, params["ln1_g"], params["ln1_b"])
    h = jnp.maximum(mm(y, params["ff_w1"]) + params["ff_b1"][None], 0.0)
    h = jnp.maximum(mm(h, params["ff_w2"]) + params["ff_b2"][None], 0.0)
    h = mm(h, params["ff_w3"]) + params["ff_b3"][None]
    return ln(h, params["ln2_g"], params["ln2_b"])


if __name__ == "__main__":
    B, S, E, H = 2, 8, 32, 4          # batch, max_time_dim, input_dim, num_heads

    key = jax.random.PRNGKey(0)
    kx, kp, kx2 = jax.random.split(key, 3)
    x = jax.random.normal(kx, (B, S, E), jnp.float32)
    time_len = jnp.array([5, 7], dtype=jnp.int32)
    params = init_params(kp, E)

    out = jax.block_until_ready(attention_block(x, time_len, params, H))
    assert out.shape == (B, S, E)
    assert bool(jnp.all(jnp.isfinite(out)))

    ref_bf16 = jax.block_until_ready(reference(x, time_len, params, H, jnp.bfloat16))
    ref_f32 = jax.block_until_ready(reference(x, time_len, params, H, jnp.float32))

    impl_err = float(jnp.max(jnp.abs(out - ref_bf16)))     # implementation correctness
    f32_err = float(jnp.max(jnp.abs(out - ref_f32)))       # precision sanity (bf16 MXU)
    bf16_noise = float(jnp.max(jnp.abs(ref_bf16 - ref_f32)))

    assert impl_err < 2e-2, f"kernel vs bf16-matched reference: {impl_err}"
    assert f32_err < bf16_noise + 2e-2, \
        f"kernel vs f32 reference: {f32_err} (bf16 reference noise {bf16_noise})"

    # Second config: exercises multiple query tiles, padded rows, and K/V scratch reuse
    # across the query-tile grid axis.
    S2 = 40
    x2 = jax.random.normal(kx2, (B, S2, E), jnp.float32)
    time_len2 = jnp.array([13, 37], dtype=jnp.int32)
    out2 = jax.block_until_ready(attention_block(x2, time_len2, params, H, tq_max=16))
    assert out2.shape == (B, S2, E)
    assert bool(jnp.all(jnp.isfinite(out2)))
    ref2 = reference(x2, time_len2, params, H, jnp.bfloat16)
    err2 = float(jnp.max(jnp.abs(out2 - ref2)))
    assert err2 < 2e-2, f"multi-tile config vs bf16-matched reference: {err2}"

    print("KERNEL_OK")
</pallas_src>

<mosaic_0001>
module attributes {stable_mosaic.version = 11 : i64} {
  func.func @_attention_block_kernel(%arg0: i32, %arg1: i32, %arg2: memref<2xi32, #tpu.memory_space<smem>>, %arg3: memref<1x16x128xbf16, #tpu.memory_space<vmem>>, %arg4: memref<1x16x128xf32, #tpu.memory_space<vmem>>, %arg5: memref<128x512xbf16, #tpu.memory_space<vmem>>, %arg6: memref<1x512xf32, #tpu.memory_space<vmem>>, %arg7: memref<128x512xbf16, #tpu.memory_space<vmem>>, %arg8: memref<1x512xf32, #tpu.memory_space<vmem>>, %arg9: memref<128x512xbf16, #tpu.memory_space<vmem>>, %arg10: memref<1x512xf32, #tpu.memory_space<vmem>>, %arg11: memref<512x128xbf16, #tpu.memory_space<vmem>>, %arg12: memref<1x128xf32, #tpu.memory_space<vmem>>, %arg13: memref<1x128xf32, #tpu.memory_space<vmem>>, %arg14: memref<1x128xf32, #tpu.memory_space<vmem>>, %arg15: memref<128x128xbf16, #tpu.memory_space<vmem>>, %arg16: memref<1x128xf32, #tpu.memory_space<vmem>>, %arg17: memref<128x128xbf16, #tpu.memory_space<vmem>>, %arg18: memref<1x128xf32, #tpu.memory_space<vmem>>, %arg19: memref<128x128xbf16, #tpu.memory_space<vmem>>, %arg20: memref<1x128xf32, #tpu.memory_space<vmem>>, %arg21: memref<1x128xf32, #tpu.memory_space<vmem>>, %arg22: memref<1x128xf32, #tpu.memory_space<vmem>>, %arg23: memref<1x16x128xf32, #tpu.memory_space<vmem>>, %arg24: memref<16x512xbf16, #tpu.memory_space<vmem>>, %arg25: memref<16x512xbf16, #tpu.memory_space<vmem>>) attributes {dimension_semantics = [#tpu.dimension_semantics<parallel>, #tpu.dimension_semantics<arbitrary>], iteration_bounds = array<i64: 2, 1>, scalar_prefetch = 1 : i64, scratch_operands = 2 : i64, tpu.core_type = #tpu.core_type<tc>, window_params = [{transform_indices = @transform_0, window_bounds = array<i64: 1, 16, 128>}, {transform_indices = @transform_1, window_bounds = array<i64: 1, 16, 128>}, {pipeline_mode = #tpu.pipeline_mode<synchronous>, transform_indices = @transform_2, window_bounds = array<i64: 128, 512>}, {pipeline_mode = #tpu.pipeline_mode<synchronous>, transform_indices = @transform_3, window_bounds = array<i64: 1, 512>}, {pipeline_mode = #tpu.pipeline_mode<synchronous>, transform_indices = @transform_4, window_bounds = array<i64: 128, 512>}, {pipeline_mode = #tpu.pipeline_mode<synchronous>, transform_indices = @transform_5, window_bounds = array<i64: 1, 512>}, {pipeline_mode = #tpu.pipeline_mode<synchronous>, transform_indices = @transform_6, window_bounds = array<i64: 128, 512>}, {pipeline_mode = #tpu.pipeline_mode<synchronous>, transform_indices = @transform_7, window_bounds = array<i64: 1, 512>}, {pipeline_mode = #tpu.pipeline_mode<synchronous>, transform_indices = @transform_8, window_bounds = array<i64: 512, 128>}, {pipeline_mode = #tpu.pipeline_mode<synchronous>, transform_indices = @transform_9, window_bounds = array<i64: 1, 128>}, {pipeline_mode = #tpu.pipeline_mode<synchronous>, transform_indices = @transform_10, window_bounds = array<i64: 1, 128>}, {pipeline_mode = #tpu.pipeline_mode<synchronous>, transform_indices = @transform_11, window_bounds = array<i64: 1, 128>}, {pipeline_mode = #tpu.pipeline_mode<synchronous>, transform_indices = @transform_12, window_bounds = array<i64: 128, 128>}, {pipeline_mode = #tpu.pipeline_mode<synchronous>, transform_indices = @transform_13, window_bounds = array<i64: 1, 128>}, {pipeline_mode = #tpu.pipeline_mode<synchronous>, transform_indices = @transform_14, window_bounds = array<i64: 128, 128>}, {pipeline_mode = #tpu.pipeline_mode<synchronous>, transform_indices = @transform_15, window_bounds = array<i64: 1, 128>}, {pipeline_mode = #tpu.pipeline_mode<synchronous>, transform_indices = @transform_16, window_bounds = array<i64: 128, 128>}, {pipeline_mode = #tpu.pipeline_mode<synchronous>, transform_indices = @transform_17, window_bounds = array<i64: 1, 128>}, {pipeline_mode = #tpu.pipeline_mode<synchronous>, transform_indices = @transform_18, window_bounds = array<i64: 1, 128>}, {pipeline_mode = #tpu.pipeline_mode<synchronous>, transform_indices = @transform_19, window_bounds = array<i64: 1, 128>}, {transform_indices = @transform_20, window_bounds = array<i64: 1, 16, 128>}]} {
    %c0_i32 = arith.constant 0 : i32
    %0 = arith.cmpi eq, %arg1, %c0_i32 : i32
    %1 = arith.extui %0 : i1 to i32
    %c0_i32_0 = arith.constant 0 : i32
    %2 = arith.cmpi ne, %1, %c0_i32_0 : i32
    scf.if %2 {
      %c0_86 = arith.constant 0 : index
      %c0_87 = arith.constant 0 : index
      %c0_88 = arith.constant 0 : index
      %181 = vector.load %arg3[%c0_86, %c0_87, %c0_88] : memref<1x16x128xbf16, #tpu.memory_space<vmem>>, vector<1x16x128xbf16>
      %182 = vector.shape_cast %181 : vector<1x16x128xbf16> to vector<16x128xbf16>
      %c0_89 = arith.constant 0 : index
      %c0_90 = arith.constant 0 : index
      %183 = vector.load %arg7[%c0_89, %c0_90] : memref<128x512xbf16, #tpu.memory_space<vmem>>, vector<128x512xbf16>
      %cst_91 = arith.constant dense<0.000000e+00> : vector<16x512xf32>
      %184 = tpu.matmul %182, %183, %cst_91 {dimension_numbers = #tpu.dot_dimension_numbers<[1], [0], [0], [1], [0, 0, 1, 1], [], []>} : vector<16x128xbf16>, vector<128x512xbf16>, vector<16x512xf32> -> vector<16x512xf32>
      %c0_92 = arith.constant 0 : index
      %c0_93 = arith.constant 0 : index
      %185 = vector.load %arg8[%c0_92, %c0_93] : memref<1x512xf32, #tpu.memory_space<vmem>>, vector<1x512xf32>
      %186 = vector.broadcast %185 : vector<1x512xf32> to vector<16x512xf32>
      %187 = arith.addf %184, %186 : vector<16x512xf32>
      %c0_94 = arith.constant 0 : index
      %c0_95 = arith.constant 0 : index
      %188 = vector.load %arg9[%c0_94, %c0_95] : memref<128x512xbf16, #tpu.memory_space<vmem>>, vector<128x512xbf16>
      %cst_96 = arith.constant dense<0.000000e+00> : vector<16x512xf32>
      %189 = tpu.matmul %182, %188, %cst_96 {dimension_numbers = #tpu.dot_dimension_numbers<[1], [0], [0], [1], [0, 0, 1, 1], [], []>} : vector<16x128xbf16>, vector<128x512xbf16>, vector<16x512xf32> -> vector<16x512xf32>
      %c0_97 = arith.constant 0 : index
      %c0_98 = arith.constant 0 : index
      %190 = vector.load %arg10[%c0_97, %c0_98] : memref<1x512xf32, #tpu.memory_space<vmem>>, vector<1x512xf32>
      %191 = vector.broadcast %190 : vector<1x512xf32> to vector<16x512xf32>
      %192 = arith.addf %189, %191 : vector<16x512xf32>
      %193 = arith.truncf %187 : vector<16x512xf32> to vector<16x512xbf16>
      %c0_99 = arith.constant 0 : index
      %c0_100 = arith.constant 0 : index
      %194 = vector.load %arg24[%c0_99, %c0_100] : memref<16x512xbf16, #tpu.memory_space<vmem>>, vector<16x512xbf16>
      tpu.vector_store %arg24[%c0_99, %c0_100], %193 {strides = array<i32>} : memref<16x512xbf16, #tpu.memory_space<vmem>>, vector<16x512xbf16>,
      %195 = arith.truncf %192 : vector<16x512xf32> to vector<16x512xbf16>
      %c0_101 = arith.constant 0 : index
      %c0_102 = arith.constant 0 : index
      %196 = vector.load %arg25[%c0_101, %c0_102] : memref<16x512xbf16, #tpu.memory_space<vmem>>, vector<16x512xbf16>
      tpu.vector_store %arg25[%c0_101, %c0_102], %195 {strides = array<i32>} : memref<16x512xbf16, #tpu.memory_space<vmem>>, vector<16x512xbf16>,
    } else {
    }
    %c0 = arith.constant 0 : index
    %c0_1 = arith.constant 0 : index
    %c0_2 = arith.constant 0 : index
    %3 = vector.load %arg4[%c0, %c0_1, %c0_2] : memref<1x16x128xf32, #tpu.memory_space<vmem>>, vector<1x16x128xf32>
    %4 = vector.shape_cast %3 : vector<1x16x128xf32> to vector<16x128xf32>
    %5 = arith.truncf %4 : vector<16x128xf32> to vector<16x128xbf16>
    %c0_3 = arith.constant 0 : index
    %c0_4 = arith.constant 0 : index
    %6 = vector.load %arg5[%c0_3, %c0_4] : memref<128x512xbf16, #tpu.memory_space<vmem>>, vector<128x512xbf16>
    %cst = arith.constant dense<0.000000e+00> : vector<16x512xf32>
    %7 = tpu.matmul %5, %6, %cst {dimension_numbers = #tpu.dot_dimension_numbers<[1], [0], [0], [1], [0, 0, 1, 1], [], []>} : vector<16x128xbf16>, vector<128x512xbf16>, vector<16x512xf32> -> vector<16x512xf32>
    %c0_5 = arith.constant 0 : index
    %c0_6 = arith.constant 0 : index
    %8 = vector.load %arg6[%c0_5, %c0_6] : memref<1x512xf32, #tpu.memory_space<vmem>>, vector<1x512xf32>
    %9 = vector.broadcast %8 : vector<1x512xf32> to vector<16x512xf32>
    %10 = arith.addf %7, %9 : vector<16x512xf32>
    %cst_7 = arith.constant 0.353553385 : f32
    %11 = vector.broadcast %cst_7 : f32 to vector<16x512xf32>
    %12 = arith.mulf %10, %11 : vector<16x512xf32>
    %13 = arith.truncf %12 : vector<16x512xf32> to vector<16x512xbf16>
    %14 = arith.index_cast %arg0 : i32 to index
    %15 = memref.load %arg2[%14] : memref<2xi32, #tpu.memory_space<smem>>
    %c16_i32 = arith.constant 16 : i32
    %16 = arith.muli %arg1, %c16_i32 : i32
    %17 = tpu.iota {dimensions = array<i32: 0>} : vector<16x16xi32>
    %18 = vector.broadcast %16 : i32 to vector<16x16xi32>
    %19 = arith.addi %18, %17 : vector<16x16xi32>
    %20 = tpu.iota {dimensions = array<i32: 1>} : vector<16x16xi32>
    %21 = arith.cmpi sle, %20, %19 : vector<16x16xi32>
    %22 = vector.broadcast %15 : i32 to vector<16x16xi32>
    %23 = arith.cmpi sle, %20, %22 : vector<16x16xi32>
    %24 = arith.andi %21, %23 : vector<16x16xi1>
    %25 = vector.extract_strided_slice %13 {offsets = [0, 0], sizes = [16, 128], strides = [1, 1]} : vector<16x512xbf16> to vector<16x128xbf16>
    %c0_8 = arith.constant 0 : index
    %c0_9 = arith.constant 0 : index
    %26 = vector.load %arg24[%c0_8, %c0_9] : memref<16x512xbf16, #tpu.memory_space<vmem>>, vector<16x128xbf16>
    %c0_10 = arith.constant 0 : index
    %c0_11 = arith.constant 0 : index
    %27 = vector.load %arg25[%c0_10, %c0_11] : memref<16x512xbf16, #tpu.memory_space<vmem>>, vector<16x128xbf16>
    %cst_12 = arith.constant dense<0.000000e+00> : vector<16x16xf32>
    %28 = tpu.matmul %25, %26, %cst_12 {dimension_numbers = #tpu.dot_dimension_numbers<[1], [1], [0], [0], [0, 0, 1, 0], [], []>} : vector<16x128xbf16>, vector<16x128xbf16>, vector<16x16xf32> -> vector<16x16xf32>
    %cst_13 = arith.constant -1.000000e+30 : f32
    %29 = vector.broadcast %cst_13 : f32 to vector<16x16xf32>
    %30 = arith.select %24, %28, %29 : vector<16x16xi1>, vector<16x16xf32>
    %cst_14 = arith.constant dense<0xFF800000> : vector<16xf32>
    %31 = vector.multi_reduction <maximumf>, %30, %cst_14 [1] : vector<16x16xf32> to vector<16xf32>
    %32 = vector.shape_cast %31 : vector<16xf32> to vector<16x1xf32>
    %33 = vector.broadcast %32 : vector<16x1xf32> to vector<16x16xf32>
    %34 = arith.subf %30, %33 : vector<16x16xf32>
    %35 = math.exp %34 : vector<16x16xf32>
    %cst_15 = arith.constant dense<0.000000e+00> : vector<16xf32>
    %36 = vector.multi_reduction <add>, %35, %cst_15 [1] : vector<16x16xf32> to vector<16xf32>
    %37 = vector.shape_cast %36 : vector<16xf32> to vector<16x1xf32>
    %38 = vector.broadcast %37 : vector<16x1xf32> to vector<16x16xf32>
    %39 = arith.divf %35, %38 : vector<16x16xf32>
    %40 = arith.truncf %39 : vector<16x16xf32> to vector<16x16xbf16>
    %cst_16 = arith.constant dense<0.000000e+00> : vector<16x128xf32>
    %41 = tpu.matmul %40, %27, %cst_16 {dimension_numbers = #tpu.dot_dimension_numbers<[1], [0], [0], [1], [0, 0, 1, 1], [], []>} : vector<16x16xbf16>, vector<16x128xbf16>, vector<16x128xf32> -> vector<16x128xf32>
    %42 = arith.truncf %41 : vector<16x128xf32> to vector<16x128xbf16>
    %43 = vector.extract_strided_slice %13 {offsets = [0, 128], sizes = [16, 128], strides = [1, 1]} : vector<16x512xbf16> to vector<16x128xbf16>
    %c0_17 = arith.constant 0 : index
    %c128 = arith.constant 128 : index
    %44 = vector.load %arg24[%c0_17, %c128] : memref<16x512xbf16, #tpu.memory_space<vmem>>, vector<16x128xbf16>
    %c0_18 = arith.constant 0 : index
    %c128_19 = arith.constant 128 : index
    %45 = vector.load %arg25[%c0_18, %c128_19] : memref<16x512xbf16, #tpu.memory_space<vmem>>, vector<16x128xbf16>
    %cst_20 = arith.constant dense<0.000000e+00> : vector<16x16xf32>
    %46 = tpu.matmul %43, %44, %cst_20 {dimension_numbers = #tpu.dot_dimension_numbers<[1], [1], [0], [0], [0, 0, 1, 0], [], []>} : vector<16x128xbf16>, vector<16x128xbf16>, vector<16x16xf32> -> vector<16x16xf32>
    %cst_21 = arith.constant -1.000000e+30 : f32
    %47 = vector.broadcast %cst_21 : f32 to vector<16x16xf32>
    %48 = arith.select %24, %46, %47 : vector<16x16xi1>, vector<16x16xf32>
    %cst_22 = arith.constant dense<0xFF800000> : vector<16xf32>
    %49 = vector.multi_reduction <maximumf>, %48, %cst_22 [1] : vector<16x16xf32> to vector<16xf32>
    %50 = vector.shape_cast %49 : vector<16xf32> to vector<16x1xf32>
    %51 = vector.broadcast %50 : vector<16x1xf32> to vector<16x16xf32>
    %52 = arith.subf %48, %51 : vector<16x16xf32>
    %53 = math.exp %52 : vector<16x16xf32>
    %cst_23 = arith.constant dense<0.000000e+00> : vector<16xf32>
    %54 = vector.multi_reduction <add>, %53, %cst_23 [1] : vector<16x16xf32> to vector<16xf32>
    %55 = vector.shape_cast %54 : vector<16xf32> to vector<16x1xf32>
    %56 = vector.broadcast %55 : vector<16x1xf32> to vector<16x16xf32>
    %57 = arith.divf %53, %56 : vector<16x16xf32>
    %58 = arith.truncf %57 : vector<16x16xf32> to vector<16x16xbf16>
    %cst_24 = arith.constant dense<0.000000e+00> : vector<16x128xf32>
    %59 = tpu.matmul %58, %45, %cst_24 {dimension_numbers = #tpu.dot_dimension_numbers<[1], [0], [0], [1], [0, 0, 1, 1], [], []>} : vector<16x16xbf16>, vector<16x128xbf16>, vector<16x128xf32> -> vector<16x128xf32>
    %60 = arith.truncf %59 : vector<16x128xf32> to vector<16x128xbf16>
    %61 = vector.extract_strided_slice %13 {offsets = [0, 256], sizes = [16, 128], strides = [1, 1]} : vector<16x512xbf16> to vector<16x128xbf16>
    %c0_25 = arith.constant 0 : index
    %c256 = arith.constant 256 : index
    %62 = vector.load %arg24[%c0_25, %c256] : memref<16x512xbf16, #tpu.memory_space<vmem>>, vector<16x128xbf16>
    %c0_26 = arith.constant 0 : index
    %c256_27 = arith.constant 256 : index
    %63 = vector.load %arg25[%c0_26, %c256_27] : memref<16x512xbf16, #tpu.memory_space<vmem>>, vector<16x128xbf16>
    %cst_28 = arith.constant dense<0.000000e+00> : vector<16x16xf32>
    %64 = tpu.matmul %61, %62, %cst_28 {dimension_numbers = #tpu.dot_dimension_numbers<[1], [1], [0], [0], [0, 0, 1, 0], [], []>} : vector<16x128xbf16>, vector<16x128xbf16>, vector<16x16xf32> -> vector<16x16xf32>
    %cst_29 = arith.constant -1.000000e+30 : f32
    %65 = vector.broadcast %cst_29 : f32 to vector<16x16xf32>
    %66 = arith.select %24, %64, %65 : vector<16x16xi1>, vector<16x16xf32>
    %cst_30 = arith.constant dense<0xFF800000> : vector<16xf32>
    %67 = vector.multi_reduction <maximumf>, %66, %cst_30 [1] : vector<16x16xf32> to vector<16xf32>
    %68 = vector.shape_cast %67 : vector<16xf32> to vector<16x1xf32>
    %69 = vector.broadcast %68 : vector<16x1xf32> to vector<16x16xf32>
    %70 = arith.subf %66, %69 : vector<16x16xf32>
    %71 = math.exp %70 : vector<16x16xf32>
    %cst_31 = arith.constant dense<0.000000e+00> : vector<16xf32>
    %72 = vector.multi_reduction <add>, %71, %cst_31 [1] : vector<16x16xf32> to vector<16xf32>
    %73 = vector.shape_cast %72 : vector<16xf32> to vector<16x1xf32>
    %74 = vector.broadcast %73 : vector<16x1xf32> to vector<16x16xf32>
    %75 = arith.divf %71, %74 : vector<16x16xf32>
    %76 = arith.truncf %75 : vector<16x16xf32> to vector<16x16xbf16>
    %cst_32 = arith.constant dense<0.000000e+00> : vector<16x128xf32>
    %77 = tpu.matmul %76, %63, %cst_32 {dimension_numbers = #tpu.dot_dimension_numbers<[1], [0], [0], [1], [0, 0, 1, 1], [], []>} : vector<16x16xbf16>, vector<16x128xbf16>, vector<16x128xf32> -> vector<16x128xf32>
    %78 = arith.truncf %77 : vector<16x128xf32> to vector<16x128xbf16>
    %79 = vector.extract_strided_slice %13 {offsets = [0, 384], sizes = [16, 128], strides = [1, 1]} : vector<16x512xbf16> to vector<16x128xbf16>
    %c0_33 = arith.constant 0 : index
    %c384 = arith.constant 384 : index
    %80 = vector.load %arg24[%c0_33, %c384] : memref<16x512xbf16, #tpu.memory_space<vmem>>, vector<16x128xbf16>
    %c0_34 = arith.constant 0 : index
    %c384_35 = arith.constant 384 : index
    %81 = vector.load %arg25[%c0_34, %c384_35] : memref<16x512xbf16, #tpu.memory_space<vmem>>, vector<16x128xbf16>
    %cst_36 = arith.constant dense<0.000000e+00> : vector<16x16xf32>
    %82 = tpu.matmul %79, %80, %cst_36 {dimension_numbers = #tpu.dot_dimension_numbers<[1], [1], [0], [0], [0, 0, 1, 0], [], []>} : vector<16x128xbf16>, vector<16x128xbf16>, vector<16x16xf32> -> vector<16x16xf32>
    %cst_37 = arith.constant -1.000000e+30 : f32
    %83 = vector.broadcast %cst_37 : f32 to vector<16x16xf32>
    %84 = arith.select %24, %82, %83 : vector<16x16xi1>, vector<16x16xf32>
    %cst_38 = arith.constant dense<0xFF800000> : vector<16xf32>
    %85 = vector.multi_reduction <maximumf>, %84, %cst_38 [1] : vector<16x16xf32> to vector<16xf32>
    %86 = vector.shape_cast %85 : vector<16xf32> to vector<16x1xf32>
    %87 = vector.broadcast %86 : vector<16x1xf32> to vector<16x16xf32>
    %88 = arith.subf %84, %87 : vector<16x16xf32>
    %89 = math.exp %88 : vector<16x16xf32>
    %cst_39 = arith.constant dense<0.000000e+00> : vector<16xf32>
    %90 = vector.multi_reduction <add>, %89, %cst_39 [1] : vector<16x16xf32> to vector<16xf32>
    %91 = vector.shape_cast %90 : vector<16xf32> to vector<16x1xf32>
    %92 = vector.broadcast %91 : vector<16x1xf32> to vector<16x16xf32>
    %93 = arith.divf %89, %92 : vector<16x16xf32>
    %94 = arith.truncf %93 : vector<16x16xf32> to vector<16x16xbf16>
    %cst_40 = arith.constant dense<0.000000e+00> : vector<16x128xf32>
    %95 = tpu.matmul %94, %81, %cst_40 {dimension_numbers = #tpu.dot_dimension_numbers<[1], [0], [0], [1], [0, 0, 1, 1], [], []>} : vector<16x16xbf16>, vector<16x128xbf16>, vector<16x128xf32> -> vector<16x128xf32>
    %96 = arith.truncf %95 : vector<16x128xf32> to vector<16x128xbf16>
    %97 = tpu.concatenate %42, %60, %78, %96 in 1 : vector<16x128xbf16>, vector<16x128xbf16>, vector<16x128xbf16>, vector<16x128xbf16> -> vector<16x512xbf16>
    %c0_41 = arith.constant 0 : index
    %c0_42 = arith.constant 0 : index
    %98 = vector.load %arg11[%c0_41, %c0_42] : memref<512x128xbf16, #tpu.memory_space<vmem>>, vector<512x128xbf16>
    %cst_43 = arith.constant dense<0.000000e+00> : vector<16x128xf32>
    %99 = tpu.matmul %97, %98, %cst_43 {dimension_numbers = #tpu.dot_dimension_numbers<[1], [0], [0], [1], [0, 0, 1, 1], [], []>} : vector<16x512xbf16>, vector<512x128xbf16>, vector<16x128xf32> -> vector<16x128xf32>
    %c0_44 = arith.constant 0 : index
    %c0_45 = arith.constant 0 : index
    %100 = vector.load %arg12[%c0_44, %c0_45] : memref<1x128xf32, #tpu.memory_space<vmem>>, vector<1x128xf32>
    %101 = vector.broadcast %100 : vector<1x128xf32> to vector<16x128xf32>
    %102 = arith.addf %99, %101 : vector<16x128xf32>
    %103 = arith.addf %4, %102 : vector<16x128xf32>
    %c0_46 = arith.constant 0 : index
    %c0_47 = arith.constant 0 : index
    %104 = vector.load %arg13[%c0_46, %c0_47] : memref<1x128xf32, #tpu.memory_space<vmem>>, vector<1x128xf32>
    %c0_48 = arith.constant 0 : index
    %c0_49 = arith.constant 0 : index
    %105 = vector.load %arg14[%c0_48, %c0_49] : memref<1x128xf32, #tpu.memory_space<vmem>>, vector<1x128xf32>
    %cst_50 = arith.constant dense<0.000000e+00> : vector<16xf32>
    %106 = vector.multi_reduction <add>, %103, %cst_50 [1] : vector<16x128xf32> to vector<16xf32>
    %107 = vector.shape_cast %106 : vector<16xf32> to vector<16x1xf32>
    %cst_51 = arith.constant 3.125000e-02 : f32
    %108 = vector.broadcast %cst_51 : f32 to vector<16x1xf32>
    %109 = arith.mulf %107, %108 : vector<16x1xf32>
    %110 = arith.mulf %103, %103 : vector<16x128xf32>
    %cst_52 = arith.constant dense<0.000000e+00> : vector<16xf32>
    %111 = vector.multi_reduction <add>, %110, %cst_52 [1] : vector<16x128xf32> to vector<16xf32>
    %112 = vector.shape_cast %111 : vector<16xf32> to vector<16x1xf32>
    %cst_53 = arith.constant 3.125000e-02 : f32
    %113 = vector.broadcast %cst_53 : f32 to vector<16x1xf32>
    %114 = arith.mulf %112, %113 : vector<16x1xf32>
    %115 = arith.mulf %109, %109 : vector<16x1xf32>
    %116 = arith.subf %114, %115 : vector<16x1xf32>
    %cst_54 = arith.constant 0.000000e+00 : f32
    %117 = vector.broadcast %cst_54 : f32 to vector<16x1xf32>
    %118 = arith.maximumf %116, %117 : vector<16x1xf32>
    %119 = vector.broadcast %109 : vector<16x1xf32> to vector<16x128xf32>
    %120 = arith.subf %103, %119 : vector<16x128xf32>
    %cst_55 = arith.constant 9.99999974E-6 : f32
    %121 = vector.broadcast %cst_55 : f32 to vector<16x1xf32>
    %122 = arith.addf %118, %121 : vector<16x1xf32>
    %123 = math.rsqrt %122 : vector<16x1xf32>
    %124 = vector.broadcast %123 : vector<16x1xf32> to vector<16x128xf32>
    %125 = arith.mulf %120, %124 : vector<16x128xf32>
    %126 = vector.broadcast %104 : vector<1x128xf32> to vector<16x128xf32>
    %127 = arith.mulf %125, %126 : vector<16x128xf32>
    %128 = vector.broadcast %105 : vector<1x128xf32> to vector<16x128xf32>
    %129 = arith.addf %127, %128 : vector<16x128xf32>
    %130 = arith.truncf %129 : vector<16x128xf32> to vector<16x128xbf16>
    %c0_56 = arith.constant 0 : index
    %c0_57 = arith.constant 0 : index
    %131 = vector.load %arg15[%c0_56, %c0_57] : memref<128x128xbf16, #tpu.memory_space<vmem>>, vector<128x128xbf16>
    %cst_58 = arith.constant dense<0.000000e+00> : vector<16x128xf32>
    %132 = tpu.matmul %130, %131, %cst_58 {dimension_numbers = #tpu.dot_dimension_numbers<[1], [0], [0], [1], [0, 0, 1, 1], [], []>} : vector<16x128xbf16>, vector<128x128xbf16>, vector<16x128xf32> -> vector<16x128xf32>
    %c0_59 = arith.constant 0 : index
    %c0_60 = arith.constant 0 : index
    %133 = vector.load %arg16[%c0_59, %c0_60] : memref<1x128xf32, #tpu.memory_space<vmem>>, vector<1x128xf32>
    %134 = vector.broadcast %133 : vector<1x128xf32> to vector<16x128xf32>
    %135 = arith.addf %132, %134 : vector<16x128xf32>
    %cst_61 = arith.constant 0.000000e+00 : f32
    %136 = vector.broadcast %cst_61 : f32 to vector<16x128xf32>
    %137 = arith.maximumf %135, %136 : vector<16x128xf32>
    %138 = arith.truncf %137 : vector<16x128xf32> to vector<16x128xbf16>
    %c0_62 = arith.constant 0 : index
    %c0_63 = arith.constant 0 : index
    %139 = vector.load %arg17[%c0_62, %c0_63] : memref<128x128xbf16, #tpu.memory_space<vmem>>, vector<128x128xbf16>
    %cst_64 = arith.constant dense<0.000000e+00> : vector<16x128xf32>
    %140 = tpu.matmul %138, %139, %cst_64 {dimension_numbers = #tpu.dot_dimension_numbers<[1], [0], [0], [1], [0, 0, 1, 1], [], []>} : vector<16x128xbf16>, vector<128x128xbf16>, vector<16x128xf32> -> vector<16x128xf32>
    %c0_65 = arith.constant 0 : index
    %c0_66 = arith.constant 0 : index
    %141 = vector.load %arg18[%c0_65, %c0_66] : memref<1x128xf32, #tpu.memory_space<vmem>>, vector<1x128xf32>
    %142 = vector.broadcast %141 : vector<1x128xf32> to vector<16x128xf32>
    %143 = arith.addf %140, %142 : vector<16x128xf32>
    %cst_67 = arith.constant 0.000000e+00 : f32
    %144 = vector.broadcast %cst_67 : f32 to vector<16x128xf32>
    %145 = arith.maximumf %143, %144 : vector<16x128xf32>
    %146 = arith.truncf %145 : vector<16x128xf32> to vector<16x128xbf16>
    %c0_68 = arith.constant 0 : index
    %c0_69 = arith.constant 0 : index
    %147 = vector.load %arg19[%c0_68, %c0_69] : memref<128x128xbf16, #tpu.memory_space<vmem>>, vector<128x128xbf16>
    %cst_70 = arith.constant dense<0.000000e+00> : vector<16x128xf32>
    %148 = tpu.matmul %146, %147, %cst_70 {dimension_numbers = #tpu.dot_dimension_numbers<[1], [0], [0], [1], [0, 0, 1, 1], [], []>} : vector<16x128xbf16>, vector<128x128xbf16>, vector<16x128xf32> -> vector<16x128xf32>
    %c0_71 = arith.constant 0 : index
    %c0_72 = arith.constant 0 : index
    %149 = vector.load %arg20[%c0_71, %c0_72] : memref<1x128xf32, #tpu.memory_space<vmem>>, vector<1x128xf32>
    %150 = vector.broadcast %149 : vector<1x128xf32> to vector<16x128xf32>
    %151 = arith.addf %148, %150 : vector<16x128xf32>
    %c0_73 = arith.constant 0 : index
    %c0_74 = arith.constant 0 : index
    %152 = vector.load %arg21[%c0_73, %c0_74] : memref<1x128xf32, #tpu.memory_space<vmem>>, vector<1x128xf32>
    %c0_75 = arith.constant 0 : index
    %c0_76 = arith.constant 0 : index
    %153 = vector.load %arg22[%c0_75, %c0_76] : memref<1x128xf32, #tpu.memory_space<vmem>>, vector<1x128xf32>
    %cst_77 = arith.constant dense<0.000000e+00> : vector<16xf32>
    %154 = vector.multi_reduction <add>, %151, %cst_77 [1] : vector<16x128xf32> to vector<16xf32>
    %155 = vector.shape_cast %154 : vector<16xf32> to vector<16x1xf32>
    %cst_78 = arith.constant 3.125000e-02 : f32
    %156 = vector.broadcast %cst_78 : f32 to vector<16x1xf32>
    %157 = arith.mulf %155, %156 : vector<16x1xf32>
    %158 = arith.mulf %151, %151 : vector<16x128xf32>
    %cst_79 = arith.constant dense<0.000000e+00> : vector<16xf32>
    %159 = vector.multi_reduction <add>, %158, %cst_79 [1] : vector<16x128xf32> to vector<16xf32>
    %160 = vector.shape_cast %159 : vector<16xf32> to vector<16x1xf32>
    %cst_80 = arith.constant 3.125000e-02 : f32
    %161 = vector.broadcast %cst_80 : f32 to vector<16x1xf32>
    %162 = arith.mulf %160, %161 : vector<16x1xf32>
    %163 = arith.mulf %157, %157 : vector<16x1xf32>
    %164 = arith.subf %162, %163 : vector<16x1xf32>
    %cst_81 = arith.constant 0.000000e+00 : f32
    %165 = vector.broadcast %cst_81 : f32 to vector<16x1xf32>
    %166 = arith.maximumf %164, %165 : vector<16x1xf32>
    %167 = vector.broadcast %157 : vector<16x1xf32> to vector<16x128xf32>
    %168 = arith.subf %151, %167 : vector<16x128xf32>
    %cst_82 = arith.constant 9.99999974E-6 : f32
    %169 = vector.broadcast %cst_82 : f32 to vector<16x1xf32>
    %170 = arith.addf %166, %169 : vector<16x1xf32>
    %171 = math.rsqrt %170 : vector<16x1xf32>
    %172 = vector.broadcast %171 : vector<16x1xf32> to vector<16x128xf32>
    %173 = arith.mulf %168, %172 : vector<16x128xf32>
    %174 = vector.broadcast %152 : vector<1x128xf32> to vector<16x128xf32>
    %175 = arith.mulf %173, %174 : vector<16x128xf32>
    %176 = vector.broadcast %153 : vector<1x128xf32> to vector<16x128xf32>
    %177 = arith.addf %175, %176 : vector<16x128xf32>
    %c0_83 = arith.constant 0 : index
    %c0_84 = arith.constant 0 : index
    %c0_85 = arith.constant 0 : index
    %178 = vector.load %arg23[%c0_83, %c0_84, %c0_85] : memref<1x16x128xf32, #tpu.memory_space<vmem>>, vector<1x16x128xf32>
    %179 = vector.shape_cast %178 : vector<1x16x128xf32> to vector<16x128xf32>
    %180 = vector.shape_cast %177 : vector<16x128xf32> to vector<1x16x128xf32>
    tpu.vector_store %arg23[%c0_83, %c0_84, %c0_85], %180 {strides = array<i32>} : memref<1x16x128xf32, #tpu.memory_space<vmem>>, vector<1x16x128xf32>,
    return
  }
  func.func @transform_0(%arg0: i32, %arg1: i32, %arg2: memref<2xi32, #tpu.memory_space<smem>>) -> (i32, i32, i32) {
    %c0_i32 = arith.constant 0 : i32
    %c0_i32_0 = arith.constant 0 : i32
    %c0_i32_1 = arith.constant 0 : i32
    return %arg0, %c0_i32, %c0_i32_0 : i32, i32, i32
  }
  func.func @transform_1(%arg0: i32, %arg1: i32, %arg2: memref<2xi32, #tpu.memory_space<smem>>) -> (i32, i32, i32) {
    %c0_i32 = arith.constant 0 : i32
    %c0_i32_0 = arith.constant 0 : i32
    return %arg0, %arg1, %c0_i32 : i32, i32, i32
  }
  func.func @transform_2(%arg0: i32, %arg1: i32, %arg2: memref<2xi32, #tpu.memory_space<smem>>) -> (i32, i32) {
    %c0_i32 = arith.constant 0 : i32
    %c0_i32_0 = arith.constant 0 : i32
    %c0_i32_1 = arith.constant 0 : i32
    return %c0_i32, %c0_i32_0 : i32, i32
  }
  func.func @transform_3(%arg0: i32, %arg1: i32, %arg2: memref<2xi32, #tpu.memory_space<smem>>) -> (i32, i32) {
    %c0_i32 = arith.constant 0 : i32
    %c0_i32_0 = arith.constant 0 : i32
    %c0_i32_1 = arith.constant 0 : i32
    return %c0_i32, %c0_i32_0 : i32, i32
  }
  func.func @transform_4(%arg0: i32, %arg1: i32, %arg2: memref<2xi32, #tpu.memory_space<smem>>) -> (i32, i32) {
    %c0_i32 = arith.constant 0 : i32
    %c0_i32_0 = arith.constant 0 : i32
    %c0_i32_1 = arith.constant 0 : i32
    return %c0_i32, %c0_i32_0 : i32, i32
  }
  func.func @transform_5(%arg0: i32, %arg1: i32, %arg2: memref<2xi32, #tpu.memory_space<smem>>) -> (i32, i32) {
    %c0_i32 = arith.constant 0 : i32
    %c0_i32_0 = arith.constant 0 : i32
    %c0_i32_1 = arith.constant 0 : i32
    return %c0_i32, %c0_i32_0 : i32, i32
  }
  func.func @transform_6(%arg0: i32, %arg1: i32, %arg2: memref<2xi32, #tpu.memory_space<smem>>) -> (i32, i32) {
    %c0_i32 = arith.constant 0 : i32
    %c0_i32_0 = arith.constant 0 : i32
    %c0_i32_1 = arith.constant 0 : i32
    return %c0_i32, %c0_i32_0 : i32, i32
  }
  func.func @transform_7(%arg0: i32, %arg1: i32, %arg2: memref<2xi32, #tpu.memory_space<smem>>) -> (i32, i32) {
    %c0_i32 = arith.constant 0 : i32
    %c0_i32_0 = arith.constant 0 : i32
    %c0_i32_1 = arith.constant 0 : i32
    return %c0_i32, %c0_i32_0 : i32, i32
  }
  func.func @transform_8(%arg0: i32, %arg1: i32, %arg2: memref<2xi32, #tpu.memory_space<smem>>) -> (i32, i32) {
    %c0_i32 = arith.constant 0 : i32
    %c0_i32_0 = arith.constant 0 : i32
    %c0_i32_1 = arith.constant 0 : i32
    return %c0_i32, %c0_i32_0 : i32, i32
  }
  func.func @transform_9(%arg0: i32, %arg1: i32, %arg2: memref<2xi32, #tpu.memory_space<smem>>) -> (i32, i32) {
    %c0_i32 = arith.constant 0 : i32
    %c0_i32_0 = arith.constant 0 : i32
    %c0_i32_1 = arith.constant 0 : i32
    return %c0_i32, %c0_i32_0 : i32, i32
  }
  func.func @transform_10(%arg0: i32, %arg1: i32, %arg2: memref<2xi32, #tpu.memory_space<smem>>) -> (i32, i32) {
    %c0_i32 = arith.constant 0 : i32
    %c0_i32_0 = arith.constant 0 : i32
    %c0_i32_1 = arith.constant 0 : i32
    return %c0_i32, %c0_i32_0 : i32, i32
  }
  func.func @transform_11(%arg0: i32, %arg1: i32, %arg2: memref<2xi32, #tpu.memory_space<smem>>) -> (i32, i32) {
    %c0_i32 = arith.constant 0 : i32
    %c0_i32_0 = arith.constant 0 : i32
    %c0_i32_1 = arith.constant 0 : i32
    return %c0_i32, %c0_i32_0 : i32, i32
  }
  func.func @transform_12(%arg0: i32, %arg1: i32, %arg2: memref<2xi32, #tpu.memory_space<smem>>) -> (i32, i32) {
    %c0_i32 = arith.constant 0 : i32
    %c0_i32_0 = arith.constant 0 : i32
    %c0_i32_1 = arith.constant 0 : i32
    return %c0_i32, %c0_i32_0 : i32, i32
  }
  func.func @transform_13(%arg0: i32, %arg1: i32, %arg2: memref<2xi32, #tpu.memory_space<smem>>) -> (i32, i32) {
    %c0_i32 = arith.constant 0 : i32
    %c0_i32_0 = arith.constant 0 : i32
    %c0_i32_1 = arith.constant 0 : i32
    return %c0_i32, %c0_i32_0 : i32, i32
  }
  func.func @transform_14(%arg0: i32, %arg1: i32, %arg2: memref<2xi32, #tpu.memory_space<smem>>) -> (i32, i32) {
    %c0_i32 = arith.constant 0 : i32
    %c0_i32_0 = arith.constant 0 : i32
    %c0_i32_1 = arith.constant 0 : i32
    return %c0_i32, %c0_i32_0 : i32, i32
  }
  func.func @transform_15(%arg0: i32, %arg1: i32, %arg2: memref<2xi32, #tpu.memory_space<smem>>) -> (i32, i32) {
    %c0_i32 = arith.constant 0 : i32
    %c0_i32_0 = arith.constant 0 : i32
    %c0_i32_1 = arith.constant 0 : i32
    return %c0_i32, %c0_i32_0 : i32, i32
  }
  func.func @transform_16(%arg0: i32, %arg1: i32, %arg2: memref<2xi32, #tpu.memory_space<smem>>) -> (i32, i32) {
    %c0_i32 = arith.constant 0 : i32
    %c0_i32_0 = arith.constant 0 : i32
    %c0_i32_1 = arith.constant 0 : i32
    return %c0_i32, %c0_i32_0 : i32, i32
  }
  func.func @transform_17(%arg0: i32, %arg1: i32, %arg2: memref<2xi32, #tpu.memory_space<smem>>) -> (i32, i32) {
    %c0_i32 = arith.constant 0 : i32
    %c0_i32_0 = arith.constant 0 : i32
    %c0_i32_1 = arith.constant 0 : i32
    return %c0_i32, %c0_i32_0 : i32, i32
  }
  func.func @transform_18(%arg0: i32, %arg1: i32, %arg2: memref<2xi32, #tpu.memory_space<smem>>) -> (i32, i32) {
    %c0_i32 = arith.constant 0 : i32
    %c0_i32_0 = arith.constant 0 : i32
    %c0_i32_1 = arith.constant 0 : i32
    return %c0_i32, %c0_i32_0 : i32, i32
  }
  func.func @transform_19(%arg0: i32, %arg1: i32, %arg2: memref<2xi32, #tpu.memory_space<smem>>) -> (i32, i32) {
    %c0_i32 = arith.constant 0 : i32
    %c0_i32_0 = arith.constant 0 : i32
    %c0_i32_1 = arith.constant 0 : i32
    return %c0_i32, %c0_i32_0 : i32, i32
  }
  func.func @transform_20(%arg0: i32, %arg1: i32, %arg2: memref<2xi32, #tpu.memory_space<smem>>) -> (i32, i32, i32) {
    %c0_i32 = arith.constant 0 : i32
    %c0_i32_0 = arith.constant 0 : i32
    return %arg0, %arg1, %c0_i32 : i32, i32, i32
  }
}

</mosaic_0001>

<bundles_post_ra>
// kernel: tpu_custom_call.1
= control target key start
LH: loop header
LB: loop body
LE: loop exit
PB: predicated region body
PF: predicated region fallthrough
CT: control target
= control target key end

     0   :  { %s5117_s0 = inlined_call_operand.hbm [shape: s32[2], index: 0, kind: input, shape index: {}]   ;;  %s5118_s1 = inlined_call_operand.hbm [shape: bf16[2,16,128], index: 1, kind: input, shape index: {}]   ;;  %s5119_s2 = inlined_call_operand.hbm [shape: f32[2,16,128], index: 2, kind: input, shape index: {}]   ;;  %s5120_s3 = inlined_call_operand.hbm [shape: bf16[128,512], index: 3, kind: input, shape index: {}]   ;;  %s5121_s4 = inlined_call_operand.vmem [shape: f32[1,512], index: 4, kind: input, shape index: {}]   ;;  %s5122_s5 = inlined_call_operand.hbm [shape: bf16[128,512], index: 5, kind: input, shape index: {}]   ;;  %s5123_s6 = inlined_call_operand.vmem [shape: f32[1,512], index: 6, kind: input, shape index: {}]   ;;  %s5124_s7 = inlined_call_operand.hbm [shape: bf16[128,512], index: 7, kind: input, shape index: {}]   ;;  %s5125_s8 = inlined_call_operand.vmem [shape: f32[1,512], index: 8, kind: input, shape index: {}]   ;;  %s5126_s9 = inlined_call_operand.hbm [shape: bf16[512,128], index: 9, kind: input, shape index: {}]   ;;  %s5127_s10 = inlined_call_operand.vmem [shape: f32[1,128], index: 10, kind: input, shape index: {}]   ;;  %s5128_s11 = inlined_call_operand.vmem [shape: f32[1,128], index: 11, kind: input, shape index: {}]   ;;  %s5129_s12 = inlined_call_operand.vmem [shape: f32[1,128], index: 12, kind: input, shape index: {}]   ;;  %s5130_s13 = inlined_call_operand.hbm [shape: bf16[128,128], index: 13, kind: input, shape index: {}]   ;;  %s5131_s14 = inlined_call_operand.vmem [shape: f32[1,128], index: 14, kind: input, shape index: {}]   ;;  %s5132_s15 = inlined_call_operand.hbm [shape: bf16[128,128], index: 15, kind: input, shape index: {}]   ;;  %s5133_s16 = inlined_call_operand.vmem [shape: f32[1,128], index: 16, kind: input, shape index: {}]   ;;  %s5134_s17 = inlined_call_operand.hbm [shape: bf16[128,128], index: 17, kind: input, shape index: {}]   ;;  %s5135_s18 = inlined_call_operand.vmem [shape: f32[1,128], index: 18, kind: input, shape index: {}]   ;;  %s5136_s19 = inlined_call_operand.vmem [shape: f32[1,128], index: 19, kind: input, shape index: {}]   ;;  %s5137_s20 = inlined_call_operand.vmem [shape: f32[1,128], index: 20, kind: input, shape index: {}]   ;;  %s5138_s21 = inlined_call_operand.hbm [shape: f32[2,16,128], index: 21, kind: output, shape index: {}]  }
   0x1   :  { %5149 = sst [smem:[#allocation36_spill]] %s5117_s0 }
   0x2   :  { %5150 = sst [smem:[#allocation37_spill]] %s5118_s1 }
   0x3   :  { %5151 = sst [smem:[#allocation38_spill]] %s5119_s2  ;;  %s4468_s2 = smov [#allocation5]  }
   0x4   :  { %5152 = sst [smem:[#allocation39_spill]] %s5120_s3 }
   0x5   :  { %5153 = sst [smem:[#allocation40_spill]] %s5121_s4 }
   0x6   :  { %5154 = sst [smem:[#allocation41_spill]] %s5122_s5 }
   0x7   :  { %5155 = sst [smem:[#allocation42_spill]] %s5124_s7 }
   0x8   :  { %5156 = sst [smem:[#allocation43_spill]] %s5126_s9 }
   0x9   :  { %5157 = sst [smem:[#allocation44_spill]] %s5129_s12 }
   0xa   :  { %5158 = sst [smem:[#allocation45_spill]] %s5130_s13 }
   0xb   :  { %5159 = sst [smem:[#allocation46_spill]] %s5131_s14 }
   0xc   :  { %5160 = sst [smem:[#allocation47_spill]] %s5132_s15 }
   0xd   :  { %5161 = sst [smem:[#allocation48_spill]] %s5133_s16 }
   0xe   :  { %5162 = sst [smem:[#allocation49_spill]] %s5134_s17 }
   0xf   :  { %5163 = sst [smem:[#allocation50_spill]] %s5135_s18 }
  0x10   :  { %5164 = sst [smem:[#allocation51_spill]] %s5136_s19 }
  0x11   :  { %5165 = sst [smem:[#allocation52_spill]] %s5137_s20 }
  0x12   :  { %5166 = sst [smem:[#allocation53_spill]] %s5138_s21 }
  0x13   :  { %s5167_s14 = sld [smem:[#allocation36_spill]] }
  0x19   :  { %27 = dma.hbm_to_smem %s5167_s14, 16, %s4468_s2, [#allocation4] }
  0x1a   :  { %4414 = dma.done.wait [#allocation4], 16 }
  0x1b   :  { %4415 = vsyncadd [#allocation4], 4294967280 }
  0x1c   :  { %29 = sfence }
  0x1d   :  { %30 = vsyncpa [#allocation7], 0 }
  0x1e   :  { %32 = vsyncpa [#allocation7 + $0x1], 0 }
  0x1f   :  { %33 = vsyncpa [#allocation10], 0 }
  0x20   :  { %35 = vsyncpa [#allocation10 + $0x1], 0 }
  0x21   :  { %36 = vsyncpa [#allocation13], 0 }
  0x22   :  { %37 = vsyncpa [#allocation16], 0 }
  0x23   :  { %38 = vsyncpa [#allocation19], 0 }
  0x24   :  { %39 = vsyncpa [#allocation8], 0 }
  0x25   :  { %41 = vsyncpa [#allocation8 + $0x1], 0  ;;  %s4603_s27 = smov 0   ;;  %s4605_s3 = smov 0  }
  0x26   :  { %s4607_s28 = smov 0   ;;  %s4609_s29 = smov 0  }
  0x27   :  { %s4611_s14 = smov 0   ;;  %s4613_s0 = smov 0  }
  0x28 LB: > { %5168 = sst [smem:[#allocation30_spill]] %s4446_s27  ;;  %s4634_s4 = sadd.s32 4294967295, %s4466_s0   ;;  %s4466_s0 = sphi %s4613_s0, %s47_s0   ;;  %s4462_s14 = sphi %s4611_s14, %s5215_s14   ;;  %s4458_s29 = sphi %s4609_s29, %s5214_s29   ;;  %s4454_s28 = sphi %s4607_s28, %s5210_s28   ;;  %s4450_s3 = sphi %s4605_s3, %s5213_s3   ;;  %s4446_s27 = sphi %s4603_s27, %s5212_s27  }
  0x29   : > { %5169 = sst [smem:[#allocation31_spill]] %s4454_s28  ;;  %p3301_p0 = scmp.ge.s32.totalorder %s4466_s0, 1 }
  0x2a   : > { %5170 = sst [smem:[#allocation32_spill]] %s4466_s0  ;;  %p80_p1 = scmp.eq.s32.totalorder %s4634_s4, 0 }
  0x2b   : > { %p524_p2 = scmp.lt.s32.totalorder %s4466_s0, 3  ;;  %s4469_s5 = smov [#allocation11]  }
  0x2c   : > { %s536_s22 = sshll.u32 %s4469_s5, 4  ;;  %s4470_s1 = smov [#allocation12]   ;;  %s537_s22 = int_to_ptr.vmem [resolvable:$true] %s536_s22 }
  0x2d   : > { %p4639_p3 = pnand %p3301_p0, %p524_p2  ;;  %s552_s24 = sshll.u32 %s4470_s1, 4  ;;  %s553_s24 = int_to_ptr.vmem [resolvable:$true] %s552_s24 }
  0x2e   : > { %s4471_s2 = smov [#allocation15]   ;;  %s4137_s5 = scalar_lea.vmem %s537_s22, 4096 }
  0x2f   : > { %p3753_p4 = pneg %p4639_p3  ;;  %s584_s25 = sshll.u32 %s4471_s2, 4  ;;  %s585_s25 = int_to_ptr.vmem [resolvable:$true] %s584_s25 }
  0x30   : > { %p4138_p8 = scmp.ne.s32.totalorder %s537_s22, %s4137_s5  ;;  %p4145_p11 = scmp.lt.s32.totalorder %s537_s22, %s537_s22 }
  0x31   : > { %p4648_p6 = pnand %p3753_p4, %p80_p1  ;;  %p4146_p12 = scmp.lt.s32.totalorder %s4137_s5, %s4137_s5 }
  0x33   : > { %p4654_p7 = pneg %p4648_p6  ;;  %p4147_p13 = por %p4146_p12, %p4145_p11 }
  0x35   : > { %p4140_p9 = pnand %p4138_p8, %p4654_p7 }
  0x37   : > { %p4141_p10 = pneg %p4140_p9 }
  0x39   : > { %p4148_p0 = pnand %p4147_p13, %p4141_p10 }
  0x3b   : > { %4151 = shalt.err (!%p4148_p0)
}
  0x3c   : > { %s4472_s1 = smov 256   ;;  %s4473_s2 = smov 16  }
  0x3d   : > { %s5174_s19 = sld [smem:[#allocation39_spill]]  ;;  %s4163_s18 = scalar_lea.vmem %s553_s24, 4096 }
  0x3e   : > { %p4164_p2 = scmp.ne.s32.totalorder %s553_s24, %s4163_s18  ;;  %p4171_p9 = scmp.lt.s32.totalorder %s553_s24, %s553_s24 }
  0x3f   : > { %p4172_p10 = scmp.lt.s32.totalorder %s4163_s18, %s4163_s18 }
  0x40   : > { %p4166_p4 = pnand %p4164_p2, %p4654_p7 }
  0x41   : > { %p4173_p11 = por %p4172_p10, %p4171_p9 }
  0x42   : > { %p4167_p8 = pneg %p4166_p4 }
  0x43   : > { %3756 = dma.hbm_to_vmem [thread:$0]  (!%p4648_p6), %s5174_s19, 4096, %s537_s22, [#allocation10], %s4472_s1, %s4472_s1, %s4473_s2  }
  0x44   : > { %p4174_p12 = pnand %p4173_p11, %p4167_p8 }
  0x46   : > { %4177 = shalt.err (!%p4174_p12)
}
  0x47   : > { %s5175_s12 = sld [smem:[#allocation41_spill]]  ;;  %s4189_s19 = scalar_lea.vmem %s585_s25, 4096 }
  0x48   : > { %p4190_p13 = scmp.ne.s32.totalorder %s585_s25, %s4189_s19  ;;  %p4197_p4 = scmp.lt.s32.totalorder %s585_s25, %s585_s25 }
  0x49   : > { %p4198_p9 = scmp.lt.s32.totalorder %s4189_s19, %s4189_s19 }
  0x4a   : > { %p4192_p0 = pnand %p4190_p13, %p4654_p7 }
  0x4b   : > { %p4199_p8 = por %p4198_p9, %p4197_p4 }
  0x4c   : > { %p4193_p2 = pneg %p4192_p0 }
  0x4d   : > { %3759 = dma.hbm_to_vmem [thread:$0]  (!%p4648_p6), %s5175_s12, 4096, %s553_s24, [#allocation13], %s4472_s1, %s4472_s1, %s4473_s2  }
  0x4e   : > { %p4200_p10 = pnand %p4199_p8, %p4193_p2 }
  0x50   : > { %4203 = shalt.err (!%p4200_p10)
}
  0x51   : > { %s5140_s18 = smov 64   ;;  %s5142_s20 = smov 4  }
  0x52   : > { %s5176_s9 = sld [smem:[#allocation43_spill]]  ;;  %s4476_s21 = smov [#allocation18]  }
  0x53   : > { %s622_s22 = sshll.u32 %s4476_s21, 4  ;;  %s4477_s24 = smov [#allocation14]   ;;  %s623_s22 = int_to_ptr.vmem [resolvable:$true] %s622_s22 }
  0x54   : > { %s568_s5 = sshll.u32 %s4477_s24, 4  ;;  %s4215_s19 = scalar_lea.vmem %s623_s22, 1024  ;;  %s569_s5 = int_to_ptr.vmem [resolvable:$true] %s568_s5 }
  0x55   : > { %p4216_p11 = scmp.ne.s32.totalorder %s623_s22, %s4215_s19  ;;  %p4223_p0 = scmp.lt.s32.totalorder %s623_s22, %s623_s22 }
  0x56   : > { %p4224_p2 = scmp.lt.s32.totalorder %s4215_s19, %s4215_s19 }
  0x57   : > { %p4218_p12 = pnand %p4216_p11, %p4654_p7 }
  0x58   : > { %3765 = dma.hbm_to_vmem [thread:$0]  (!%p4648_p6), %s5176_s9, 4096, %s585_s25, [#allocation16], %s5140_s18, %s5140_s18, %s5142_s20  }
  0x59   : > { %p4219_p13 = pneg %p4218_p12  ;;  %p4225_p4 = por %p4224_p2, %p4223_p0 }
  0x5b   : > { %p4226_p9 = pnand %p4225_p4, %p4219_p13 }
  0x5d   : > { %4229 = shalt.err (!%p4226_p9)
}
  0x5e   : > { %s5177_s15 = sld [smem:[#allocation47_spill]]  ;;  %s4241_s16 = scalar_lea.vmem %s569_s5, 4096 }
  0x5f   : > { %p4242_p8 = scmp.ne.s32.totalorder %s569_s5, %s4241_s16  ;;  %p4249_p12 = scmp.lt.s32.totalorder %s569_s5, %s569_s5 }
  0x60   : > { %p4250_p0 = scmp.lt.s32.totalorder %s4241_s16, %s4241_s16 }
  0x61   : > { %p4244_p10 = pnand %p4242_p8, %p4654_p7 }
  0x62   : > { %p4251_p13 = por %p4250_p0, %p4249_p12 }
  0x63   : > { %p4245_p11 = pneg %p4244_p10 }
  0x64   : > { %3771 = dma.hbm_to_vmem [thread:$0]  (!%p4648_p6), %s5177_s15, 1024, %s623_s22, [#allocation19], %s5140_s18, %s5140_s18, %s5142_s20  }
  0x65   : > { %p4252_p2 = pnand %p4251_p13, %p4245_p11 }
  0x67   : > { %4255 = shalt.err (!%p4252_p2)
}
  0x68   : > { %s5178_s7 = sld [smem:[#allocation42_spill]]  ;;  %s4478_s22 = smov [#allocation17]  }
  0x69   : > { %s606_s19 = sshll.u32 %s4478_s22, 4  ;;  %s4479_s25 = smov [#allocation20]   ;;  %s607_s19 = int_to_ptr.vmem [resolvable:$true] %s606_s19 }
  0x6a   : > { %s638_s12 = sshll.u32 %s4479_s25, 4  ;;  %s4267_s18 = scalar_lea.vmem %s607_s19, 1024  ;;  %s639_s12 = int_to_ptr.vmem [resolvable:$true] %s638_s12 }
  0x6b   : > { %p4268_p4 = scmp.ne.s32.totalorder %s607_s19, %s4267_s18  ;;  %p4275_p10 = scmp.lt.s32.totalorder %s607_s19, %s607_s19 }
  0x6c   : > { %p4276_p11 = scmp.lt.s32.totalorder %s4267_s18, %s4267_s18 }
  0x6d   : > { %p4270_p9 = pnand %p4268_p4, %p4654_p7 }
  0x6e   : > { %3762 = dma.hbm_to_vmem [thread:$0]  (!%p4648_p6), %s5178_s7, 4096, %s569_s5, [#allocation13], %s4472_s1, %s4472_s1, %s4473_s2  }
  0x6f   : > { %p4271_p8 = pneg %p4270_p9  ;;  %p4277_p12 = por %p4276_p11, %p4275_p10 }
  0x71   : > { %p4278_p0 = pnand %p4277_p12, %p4271_p8 }
  0x73   : > { %4281 = shalt.err (!%p4278_p0)
}
  0x74   : > { %s5179_s16 = smov 64   ;;  %s5180_s13 = sld [smem:[#allocation45_spill]] }
  0x75   : > { %s4293_s5 = scalar_lea.vmem %s639_s12, 1024  ;;  %p4301_p9 = scmp.lt.s32.totalorder %s639_s12, %s639_s12 }
  0x76   : > { %p4294_p13 = scmp.ne.s32.totalorder %s639_s12, %s4293_s5  ;;  %p4302_p10 = scmp.lt.s32.totalorder %s4293_s5, %s4293_s5 }
  0x78   : > { %p4296_p2 = pnand %p4294_p13, %p4654_p7  ;;  %p4303_p8 = por %p4302_p10, %p4301_p9 }
  0x7a   : > { %3768 = dma.hbm_to_vmem [thread:$0]  (!%p4648_p6), %s5180_s13, 1024, %s607_s19, [#allocation16], %s5179_s16, %s5179_s16, %s5142_s20  }
  0x7b   : > { %p4297_p4 = pneg %p4296_p2 }
  0x7d   : > { %p4304_p11 = pnand %p4303_p8, %p4297_p4 }
  0x7f   : > { %4307 = shalt.err (!%p4304_p11)
}
  0x80   : > { %s5181_s17 = sld [smem:[#allocation49_spill]]  ;;  %s3300_s23 = sadd.s32 4294967294, %s4466_s0  }
  0x81   : > { %s59_s26 = sadd.s32 1, %s4462_s14  ;;  %s66_s24 = sadd.s32 1, %s4454_s28 }
  0x82   : > { %p61_p7 = scmp.ge.s32.totalorder %s59_s26, 2  ;;  %p73_p12 = scmp.ne.s32.totalorder %s4454_s28, %s4450_s3 }
  0x83   : > { %p74_p0 = scmp.eq.s32.totalorder %s4466_s0, 0  ;;  %p79_p13 = scmp.ne.s32.totalorder %s4450_s3, %s4446_s27 }
  0x84   : > { %s5217_s26 = smov (%p61_p7, %s59_s26), 0  ;;  %p511_p4 = scmp.eq.s32.totalorder %s4634_s4, 1 }
  0x85   : > { %5182 = sst [smem:[#allocation33_spill]] %s5217_s26  ;;  %p4738_p2 = por %p74_p0, %p73_p12 }
  0x86   : > { %3774 = dma.hbm_to_vmem [thread:$0]  (!%p4648_p6), %s5181_s17, 1024, %s639_s12, [#allocation19], %s5179_s16, %s5179_s16, %s5142_s20  }
  0x87   : > { %p4744_p6 = por %p80_p1, %p79_p13  ;;  %s63_s25 = ssub.s32 %s4462_s14, %s5217_s26 }
  0x88   : > { %p64_p9 = scmp.eq.s32.totalorder %s63_s25, 0  ;;  %p517_p10 = scmp.eq.s32.totalorder %s3300_s23, 1 }
  0x89   : > { %p4751_p8 = por %p511_p4, %p73_p12  ;;  %p3793_p11 = scmp.lt.s32.totalorder %s4466_s0, 2 }
  0x8a   : > { %s4757_s1 = scalar_select %p64_p9, %s4454_s28, %s66_s24  }
  0x8b   : > { %p4759_p7 = por %p517_p10, %p79_p13  ;;  %s4764_s5 = sand.u32 1, %s4454_s28  }
  0x8c   : > { %5186 = sst [smem:[#allocation34_spill]] %s4757_s1  ;;  %s3310_s18 = sshll.u32 %s4764_s5, 3 }
  0x8d   : > { %s5187_s2 = scalar_select %p4759_p7, 1, 0 }
  0x8e   : > { %s3513_s21 = sshll.u32 %s4462_s14, 7  ;;  %s5189_s20 = sld [smem:[#allocation37_spill]] }
  0x8f   : > { %5188 = sst [smem:[#allocation35_spill]] %s5187_s2  ;;  %s665_s9 = scalar_lea.vmem [#allocation6], %s3310_s18 }
  0x90   : > { %s672_s13 = sshll.u32 %s665_s9, 4  ;;  %p4773_p12 = pnand %p3793_p11, %p4738_p2  ;;  %s673_s13 = int_to_ptr.vmem [resolvable:$true] %s672_s13 }
  0x91   : > { %s682_s15 = sand.u32 1, %s4466_s0   ;;  %s3313_s17 = sshll.u32 %s4764_s5, 4 }
  0x92   : > { %s662_s26 = scalar_lea.sflag [#allocation7], %s4764_s5  ;;  %p4310_p0 = pneg %p4773_p12 }
  0x93   : > { %s4321_s1 = scalar_lea.vmem %s673_s13, 128  ;;  %s4480_s9 = smov [#allocation6]  }
  0x94   : > { %s671_s7 = scalar_lea.hbm %s5189_s20, %s3513_s21  ;;  %p4322_p13 = scmp.ne.s32.totalorder %s673_s13, %s4321_s1 }
  0x95   : > { %s4326_s20 = sshll.u32 %s4480_s9, 4  ;;  %s4327_s20 = int_to_ptr.vmem [resolvable:$false] %s4326_s20 }
  0x96   : > { %p4324_p4 = pnand %p4322_p13, %p4310_p0  ;;  %s4328_s22 = scalar_lea.vmem %s4327_s20, 256 }
  0x97   : > { %p4329_p2 = scmp.lt.s32.totalorder %s673_s13, %s4327_s20  ;;  %p4330_p10 = scmp.lt.s32.totalorder %s4328_s22, %s4321_s1 }
  0x98   : > { %p4325_p9 = pneg %p4324_p4 }
  0x99   : > { %p4331_p11 = por %p4330_p10, %p4329_p2 }
  0x9b   : > { %p4332_p5 = pnand %p4331_p11, %p4325_p9 }
  0x9d   : > { %4335 = shalt.err (!%p4332_p5)
}
  0x9e   : > { %s5191_s5 = smov 4   ;;  %s3514_s18 = sshll.u32 %s4462_s14, 8 }
  0x9f   : > { %3778 = dma.hbm_to_vmem [thread:$0]  (!%p4773_p12), %s671_s7, 128, %s673_s13, %s662_s26, %s5179_s16, %s5179_s16, %s5191_s5  }
  0xa0   : > { %s5192_s23 = sld [smem:[#allocation38_spill]]  ;;  %s686_s28 = scalar_lea.vmem [#allocation9], %s3313_s17 }
  0xa1   : > { %s695_s0 = sshll.u32 %s686_s28, 4  ;;  %s683_s1 = scalar_lea.sflag [#allocation10], %s682_s15  ;;  %s696_s0 = int_to_ptr.vmem [resolvable:$true] %s695_s0 }
  0xa2   : > { %s4349_s20 = scalar_lea.vmem %s696_s0, 256  ;;  %s4481_s22 = smov [#allocation9]  }
  0xa3   : > { %p4350_p13 = scmp.ne.s32.totalorder %s696_s0, %s4349_s20  ;;  %s4354_s2 = sshll.u32 %s4481_s22, 4  ;;  %s4355_s2 = int_to_ptr.vmem [resolvable:$false] %s4354_s2 }
  0xa4   : > { %s4356_s27 = scalar_lea.vmem %s4355_s2, 512  ;;  %p4357_p9 = scmp.lt.s32.totalorder %s696_s0, %s4355_s2 }
  0xa5   : > { %p4352_p5 = pnand %p4350_p13, %p4310_p0  ;;  %p4358_p2 = scmp.lt.s32.totalorder %s4356_s27, %s4349_s20 }
  0xa6   : > { %s694_s9 = scalar_lea.hbm %s5192_s23, %s3514_s18 }
  0xa7   : > { %p4353_p4 = pneg %p4352_p5  ;;  %p4359_p10 = por %p4358_p2, %p4357_p9 }
  0xa9   : > { %p4360_p11 = pnand %p4359_p10, %p4353_p4 }
  0xab   : > { %4363 = shalt.err (!%p4360_p11)
}
  0xac   : > { %s4482_s7 = smov 128   ;;  %s4483_s13 = smov 8  }
  0xad   : > { %3781 = dma.hbm_to_vmem [thread:$0]  (!%p4773_p12), %s694_s9, 256, %s696_s0, %s683_s1, %s4482_s7, %s4482_s7, %s4483_s13  }
  0xae   : > { %707 = sbr.rel (%p4639_p3) target bundleno = 2907 (0xb5b), region = 100  ;;  %s4802_s15 = sand.u32 (!%p4639_p3), 1, %s4450_s3  }
  0xaf   : > { %s3317_s17 = sshll.u32 (!%p4639_p3), %s4802_s15, 3  ;;  %s710_s28 = scalar_lea.sflag (!%p4639_p3), [#allocation7], %s4802_s15 }
  0xb0   : > { %s4806_s27 = scalar_lea.vmem (!%p4639_p3), [#allocation6], %s3317_s17 }
  0xb3   : > { %4417 = dma.done.wait (%p4744_p6), %s710_s28, 128  }
  0xb4   : > { %4419 = vsyncadd (%p4744_p6), %s710_s28, 4294967168  ;;  %s718_s0 = sand.u32 1, %s4634_s4   ;;  %s3318_s30 = sshll.u32 %s4802_s15, 4 }
  0xb5   : > { %s719_s16 = scalar_lea.sflag [#allocation10], %s718_s0  ;;  %s4816_s26 = scalar_lea.vmem [#allocation9], %s3318_s30 }
  0xb6   : > { %4421 = dma.done.wait (%p4744_p6), %s719_s16, 256  }
  0xb7   : > { %4423 = vsyncadd (%p4744_p6), %s719_s16, 4294967040 }
  0xb8   : > { %4425 = dma.done.wait (%p80_p1), [#allocation10], 4096  }
  0xb9   : > { %4427 = vsyncadd (%p80_p1), [#allocation10], 4294963200 }
  0xba   : > { %4429 = dma.done.wait (%p80_p1), [#allocation13], 8192  }
  0xbb   : > { %4431 = vsyncadd (%p80_p1), [#allocation13], 4294959104 }
  0xbc   : > { %4433 = dma.done.wait (%p80_p1), [#allocation16], 5120  }
  0xbd   : > { %4435 = vsyncadd (%p80_p1), [#allocation16], 4294962176 }
  0xbe   : > { %4437 = dma.done.wait (%p80_p1), [#allocation19], 2048  }
  0xbf   : > { %4439 = vsyncadd (%p80_p1), [#allocation19], 4294965248  ;;  %v4484_v0 = vmov 0   ;;  %v3869_v1 = vld [vmem:[#allocation12 + $0xe4] ss:$16 sps:$4 sm:$0xff]   ;;  %s5193_s2 = sld [smem:[#allocation40_spill]] }
  0xc0   : > { %1073 = vmatprep.mubr.bf16.mxu0 %v4484_v0  ;;  %1116 = vmatprep.mubr.bf16.mxu1 %v4484_v0  ;;  %v3871_v2 = vld [vmem:[#allocation12 + $0xe0] ss:$16 sps:$4 sm:$0xff]   ;;  %v3872_v3 = vld [vmem:[#allocation12 + $0xc4] ss:$16 sps:$4 sm:$0xff]   ;;  %v3942_v22 = vld [vmem:[#allocation12 + $0xec] ss:$16 sps:$4 sm:$0xff]  }
  0xc1   : > { %1041 = vmatprep.subr.bf16.mxu0 %v3869_v1  ;;  %v3874_v4 = vld [vmem:[#allocation12 + $0xc0] ss:$16 sps:$4 sm:$0xff]   ;;  %v3875_v5 = vld [vmem:[#allocation12 + $0xa4] ss:$16 sps:$4 sm:$0xff]   ;;  %v3944_v23 = vld [vmem:[#allocation12 + $0xe8] ss:$16 sps:$4 sm:$0xff]   ;;  %1084 = vmatprep.subr.bf16.mxu1 %v3942_v22 }
  0xc2   : > { %1042 = vmatpush1.bf16.msra.mxu0 %v3871_v2  ;;  %v3877_v6 = vld [vmem:[#allocation12 + $0xa0] ss:$16 sps:$4 sm:$0xff]   ;;  %v3878_v7 = vld [vmem:[#allocation12 + $0x84] ss:$16 sps:$4 sm:$0xff]   ;;  %v3945_v24 = vld [vmem:[#allocation12 + $0xcc] ss:$16 sps:$4 sm:$0xff]   ;;  %1085 = vmatpush1.bf16.msra.mxu1 %v3944_v23 }
  0xc3   : > { %1043 = vmatprep.subr.bf16.mxu0 %v3872_v3  ;;  %v3880_v8 = vld [vmem:[#allocation12 + $0x80] ss:$16 sps:$4 sm:$0xff]   ;;  %v3881_v9 = vld [vmem:[#allocation12 + $0x64] ss:$16 sps:$4 sm:$0xff]   ;;  %v3947_v26 = vld [vmem:[#allocation12 + $0xc8] ss:$16 sps:$4 sm:$0xff]   ;;  %1086 = vmatprep.subr.bf16.mxu1 %v3945_v24 }
  0xc4   : > { %v3883_v10 = vld [vmem:[#allocation12 + $0x60] ss:$16 sps:$4 sm:$0xff]   ;;  %v3884_v11 = vld [vmem:[#allocation12 + $0x44] ss:$16 sps:$4 sm:$0xff]   ;;  %v3948_v27 = vld [vmem:[#allocation12 + $0xac] ss:$16 sps:$4 sm:$0xff]  }
  0xc5   : > { %v3886_v12 = vld [vmem:[#allocation12 + $0x40] ss:$16 sps:$4 sm:$0xff]   ;;  %v3887_v13 = vld [vmem:[#allocation12 + $0x24] ss:$16 sps:$4 sm:$0xff]   ;;  %v3950_v30 = vld [vmem:[#allocation12 + $0xa8] ss:$16 sps:$4 sm:$0xff]  }
  0xc6   : > { %1044 = vmatpush1.bf16.msra.mxu0 %v3874_v4  ;;  %v3889_v14 = vld [vmem:[#allocation12 + $0x20] ss:$16 sps:$4 sm:$0xff]   ;;  %v3890_v15 = vld [vmem:[#allocation12 + $0x4] ss:$16 sps:$4 sm:$0xff]   ;;  %1087 = vmatpush1.bf16.msra.mxu1 %v3947_v26  ;;  %v3951_v31 = vld [vmem:[#allocation12 + $0x8c] ss:$16 sps:$4 sm:$0xff]  }
  0xc7   : > { %1045 = vmatprep.subr.bf16.mxu0 %v3875_v5  ;;  %v3892_v16 = vld [vmem:[#allocation12] ss:$16 sps:$4 sm:$0xff]   ;;  %v3896_v17 = vld [vmem:[#allocation14 + $0xe4] ss:$16 sps:$4 sm:$0xff]   ;;  %1088 = vmatprep.subr.bf16.mxu1 %v3948_v27  ;;  %v3953_v34 = vld [vmem:[#allocation12 + $0x88] ss:$16 sps:$4 sm:$0xff]  }
  0xc8   : > { %v4841_v18 = vld [vmem:[%s4806_s27] sm:$0xff]   ;;  %vm4486_vm0 = vmmov 0   ;;  %s1798_s25 = sld [smem:[#allocation5 + %s4458_s29]]  ;;  %vm1867_vm4 = vcmask 130048   ;;  %s3523_s9 = sshll.u32 %s4458_s29, 8 }
  0xc9   : > { %v3894_v19 = vld [vmem:[#allocation14 + $0xe0] ss:$16 sps:$4 sm:$0xff]   ;;  %v3899_v20 = vld [vmem:[#allocation14 + $0xc4] ss:$16 sps:$4 sm:$0xff]   ;;  %v3954_v35 = vld [vmem:[#allocation12 + $0x6c] ss:$16 sps:$4 sm:$0xff]  }
  0xca   : > { %1046 = vmatpush1.bf16.msra.mxu0 %v3877_v6  ;;  %v3897_v21 = vld [vmem:[#allocation14 + $0xc0] ss:$16 sps:$4 sm:$0xff]   ;;  %v3902_v25 = vld [vmem:[#allocation14 + $0xa4] ss:$16 sps:$4 sm:$0xff]   ;;  %1089 = vmatpush1.bf16.msra.mxu1 %v3950_v30  ;;  %v3956_v38 = vld [vmem:[#allocation12 + $0x68] ss:$16 sps:$4 sm:$0xff]  }
  0xcb   : > { %1047 = vmatprep.subr.bf16.mxu0 %v3878_v7  ;;  %v3900_v28 = vld [vmem:[#allocation14 + $0xa0] ss:$16 sps:$4 sm:$0xff]   ;;  %v3905_v29 = vld [vmem:[#allocation14 + $0x84] ss:$16 sps:$4 sm:$0xff]   ;;  %1090 = vmatprep.subr.bf16.mxu1 %v3951_v31  ;;  %v3957_v39 = vld [vmem:[#allocation12 + $0x4c] ss:$16 sps:$4 sm:$0xff]  }
  0xcc   : > { %v3903_v32 = vld [vmem:[#allocation14 + $0x80] ss:$16 sps:$4 sm:$0xff]   ;;  %v3908_v33 = vld [vmem:[#allocation14 + $0x64] ss:$16 sps:$4 sm:$0xff]   ;;  %v3959_v42 = vld [vmem:[#allocation12 + $0x48] ss:$16 sps:$4 sm:$0xff]  }
  0xcd   : > { %v3906_v36 = vld [vmem:[#allocation14 + $0x60] ss:$16 sps:$4 sm:$0xff]   ;;  %v3911_v37 = vld [vmem:[#allocation14 + $0x44] ss:$16 sps:$4 sm:$0xff]   ;;  %v3960_v43 = vld [vmem:[#allocation12 + $0x2c] ss:$16 sps:$4 sm:$0xff]  }
  0xce   : > { %1048 = vmatpush1.bf16.msra.mxu0 %v3880_v8  ;;  %1091 = vmatpush1.bf16.msra.mxu1 %v3953_v34  ;;  %v3909_v40 = vld [vmem:[#allocation14 + $0x40] ss:$16 sps:$4 sm:$0xff]   ;;  %v3914_v41 = vld [vmem:[#allocation14 + $0x24] ss:$16 sps:$4 sm:$0xff]   ;;  %v3962_v46 = vld [vmem:[#allocation12 + $0x28] ss:$16 sps:$4 sm:$0xff]  }
  0xcf   : > { %1049 = vmatprep.subr.bf16.mxu0 %v3881_v9  ;;  %1092 = vmatprep.subr.bf16.mxu1 %v3954_v35  ;;  %v3912_v44 = vld [vmem:[#allocation14 + $0x20] ss:$16 sps:$4 sm:$0xff]   ;;  %v3917_v45 = vld [vmem:[#allocation14 + $0x4] ss:$16 sps:$4 sm:$0xff]   ;;  %v3963_v47 = vld [vmem:[#allocation12 + $0xc] ss:$16 sps:$4 sm:$0xff]  }
  0xd0   : > { %v3915_v48 = vld [vmem:[#allocation14] ss:$16 sps:$4 sm:$0xff]   ;;  %v3920_v49 = vld [vmem:[#allocation11 + $0xe4] ss:$16 sps:$4 sm:$0xff]   ;;  %v3965_v50 = vld [vmem:[#allocation12 + $0x8] ss:$16 sps:$4 sm:$0xff]  }
  0xd1   : > { %v3918_v51 = vld [vmem:[#allocation11 + $0xe0] ss:$16 sps:$4 sm:$0xff]   ;;  %v3968_v52 = vld [vmem:[#allocation14 + $0xec] ss:$16 sps:$4 sm:$0xff]   ;;  %v3923_v53 = vld [vmem:[#allocation11 + $0xc4] ss:$16 sps:$4 sm:$0xff]  }
  0xd2   : > { %1050 = vmatpush1.bf16.msra.mxu0 %v3883_v10  ;;  %1093 = vmatpush1.bf16.msra.mxu1 %v3956_v38  ;;  %v3966_v54 = vld [vmem:[#allocation14 + $0xe8] ss:$16 sps:$4 sm:$0xff]   ;;  %v3971_v55 = vld [vmem:[#allocation14 + $0xcc] ss:$16 sps:$4 sm:$0xff]   ;;  %v3921_v56 = vld [vmem:[#allocation11 + $0xc0] ss:$16 sps:$4 sm:$0xff]   ;;  %v855_v38 = vlaneseq }
  0xd3   : > { %1051 = vmatprep.subr.bf16.mxu0 %v3884_v11  ;;  %1094 = vmatprep.subr.bf16.mxu1 %v3957_v39  ;;  %v3926_v57 = vld [vmem:[#allocation11 + $0xa4] ss:$16 sps:$4 sm:$0xff]   ;;  %v3969_v58 = vld [vmem:[#allocation14 + $0xc8] ss:$16 sps:$4 sm:$0xff]   ;;  %v3974_v59 = vld [vmem:[#allocation14 + $0xac] ss:$16 sps:$4 sm:$0xff]  }
  0xd4   : > { %v3924_v60 = vld [vmem:[#allocation11 + $0xa0] ss:$16 sps:$4 sm:$0xff]   ;;  %v3929_v61 = vld [vmem:[#allocation11 + $0x84] ss:$16 sps:$4 sm:$0xff]   ;;  %v3972_v62 = vld [vmem:[#allocation14 + $0xa8] ss:$16 sps:$4 sm:$0xff]  }
  0xd5   : > { %v3977_v63 = vld [vmem:[#allocation14 + $0x8c] ss:$16 sps:$4 sm:$0xff]   ;;  %v3927_v1 = vld [vmem:[#allocation11 + $0x80] ss:$16 sps:$4 sm:$0xff]   ;;  %v3932_v2 = vld [vmem:[#allocation11 + $0x64] ss:$16 sps:$4 sm:$0xff]  }
  0xd6   : > { %1052 = vmatpush1.bf16.msra.mxu0 %v3886_v12  ;;  %1095 = vmatpush1.bf16.msra.mxu1 %v3959_v42  ;;  %v3975_v3 = vld [vmem:[#allocation14 + $0x88] ss:$16 sps:$4 sm:$0xff]   ;;  %v3980_v4 = vld [vmem:[#allocation14 + $0x6c] ss:$16 sps:$4 sm:$0xff]   ;;  %v3930_v5 = vld [vmem:[#allocation11 + $0x60] ss:$16 sps:$4 sm:$0xff]  }
  0xd7   : > { %1053 = vmatprep.subr.bf16.mxu0 %v3887_v13  ;;  %1096 = vmatprep.subr.bf16.mxu1 %v3960_v43  ;;  %v3935_v6 = vld [vmem:[#allocation11 + $0x44] ss:$16 sps:$4 sm:$0xff]   ;;  %v3978_v7 = vld [vmem:[#allocation14 + $0x68] ss:$16 sps:$4 sm:$0xff]   ;;  %v3983_v8 = vld [vmem:[#allocation14 + $0x4c] ss:$16 sps:$4 sm:$0xff]  }
  0xd8   : > { %v3933_v9 = vld [vmem:[#allocation11 + $0x40] ss:$16 sps:$4 sm:$0xff]   ;;  %v3938_v10 = vld [vmem:[#allocation11 + $0x24] ss:$16 sps:$4 sm:$0xff]   ;;  %v3981_v11 = vld [vmem:[#allocation14 + $0x48] ss:$16 sps:$4 sm:$0xff]  }
  0xd9   : > { %v3986_v12 = vld [vmem:[#allocation14 + $0x2c] ss:$16 sps:$4 sm:$0xff]   ;;  %v3936_v13 = vld [vmem:[#allocation11 + $0x20] ss:$16 sps:$4 sm:$0xff]   ;;  %v3990_v24 = vld [vmem:[#allocation11 + $0xe8] ss:$16 sps:$4 sm:$0xff]  }
  0xda   : > { %1054 = vmatpush1.bf16.msra.mxu0 %v3889_v14  ;;  %1097 = vmatpush1.bf16.msra.mxu1 %v3962_v46  ;;  %v3941_v14 = vld [vmem:[#allocation11 + $0x4] ss:$16 sps:$4 sm:$0xff]   ;;  %v3992_v22 = vld [vmem:[#allocation11 + $0xec] ss:$16 sps:$4 sm:$0xff]   ;;  %v3993_v26 = vld [vmem:[#allocation11 + $0xc8] ss:$16 sps:$4 sm:$0xff]  }
  0xdb   : > { %1055 = vmatprep.subr.bf16.mxu0 %v3890_v15  ;;  %1098 = vmatprep.subr.bf16.mxu1 %v3963_v47  ;;  %v3984_v15 = vld [vmem:[#allocation14 + $0x28] ss:$16 sps:$4 sm:$0xff]   ;;  %v3998_v27 = vld [vmem:[#allocation11 + $0xac] ss:$16 sps:$4 sm:$0xff]   ;;  %v4862_v39 = vshrl.u32 %v855_v38, 7  ;;  %s5198_s13 = sld [smem:[#allocation44_spill]] }
  0xdc   : > { %v3999_v30 = vld [vmem:[#allocation11 + $0x88] ss:$16 sps:$4 sm:$0xff]   ;;  %v4004_v31 = vld [vmem:[#allocation11 + $0x6c] ss:$16 sps:$4 sm:$0xff]   ;;  %s5199_s27 = sld [smem:[#allocation46_spill]]  ;;  %s811_s1 = scalar_lea.vmem [#allocation21], %s3318_s30 }
  0xdd   : > { %v4005_v34 = vld [vmem:[#allocation11 + $0x48] ss:$16 sps:$4 sm:$0xff]   ;;  %v857_v43 = vsub.s32 0, %v4862_v39  ;;  %s5202_s18 = sld [smem:[#allocation51_spill]]  ;;  %s3123_s20 = sshll.u32 %s811_s1, 4  ;;  %s5069_s20 = int_to_ptr.vmem [resolvable:$true] %s3123_s20 }
  0xde   : > { %1056 = vmatpush1.bf16.msra.mxu0 %v3892_v16  ;;  %1099 = vmatpush1.bf16.msra.mxu1 %v3965_v50  ;;  %v3989_v16 = vld [vmem:[#allocation14 + $0xc] ss:$16 sps:$4 sm:$0xff]   ;;  %v4008_v35 = vld [vmem:[#allocation11 + $0x28] ss:$16 sps:$4 sm:$0xff]   ;;  %s5203_s23 = sld [smem:[#allocation52_spill]]  ;;  %s3108_s28 = scalar_lea.sflag [#allocation8], %s4802_s15 }
  0xdf   : > { %1341 = vmatprep.subr.bf16.mxu0 %v3896_v17  ;;  %1384 = vmatprep.subr.bf16.mxu1 %v3968_v52  ;;  %v3939_v17 = vld [vmem:[#allocation11] ss:$16 sps:$4 sm:$0xff]   ;;  %s4487_s29 = smov [#allocation21]  }
  0xe0   : > { %s4368_s30 = sshll.u32 %s4487_s29, 4  ;;  %s4369_s30 = int_to_ptr.vmem [resolvable:$false] %s4368_s30 }
  0xe1   : > { %1074 = vmatmul.mubr.bf16.vlgmr.msra.gmra.mxu0 %v4841_v18  ;;  %1117 = vmatmul.mubr.bf16.vlgmr.msra.gmra.mxu1 %v4841_v18  ;;  %s4370_s0 = scalar_lea.vmem %s4369_s30, 512  ;;  %p4371_p12 = scmp.lt.s32.totalorder %s5069_s20, %s4369_s30 }
  0xe2   : > { %1342 = vmatpush1.bf16.msra.mxu0 %v3894_v19  ;;  %1373 = vmatprep.mubr.bf16.mxu0 %v4484_v0  ;;  %v4850_v19 = vld [vmem:[%s4816_s26] sm:$0xff] }
  0xe3   : > { %1343 = vmatprep.subr.bf16.mxu0 %v3899_v20  ;;  %1385 = vmatpush1.bf16.msra.mxu1 %v3966_v54  ;;  %v4853_v20 = vld [vmem:[%s4816_s26 + $0x8] sm:$0xff]  ;;  %s5200_s26 = sld [smem:[#allocation48_spill]] }
  0xe4   : > { %1416 = vmatprep.mubr.bf16.mxu1 %v4484_v0  ;;  %1386 = vmatprep.subr.bf16.mxu1 %v3971_v55  ;;  %v1485_v23 = vpack.c.bf16 %v4853_v20, %v4850_v19 }
  0xe6   : > { %1344 = vmatpush1.bf16.msra.mxu0 %v3897_v21  ;;  %v3987_v21 = vld [vmem:[#allocation14 + $0x8] ss:$16 sps:$4 sm:$0xff]  }
  0xe7   : > { %1345 = vmatprep.subr.bf16.mxu0 %v3902_v25  ;;  %1387 = vmatpush1.bf16.msra.mxu1 %v3969_v58  ;;  %v3995_v25 = vld [vmem:[#allocation11 + $0xcc] ss:$16 sps:$4 sm:$0xff]   ;;  %v1159_v58 = vld [vmem:[%s5125_s8] sm:$0xf] }
  0xe8   : > { %1388 = vmatprep.subr.bf16.mxu1 %v3974_v59  ;;  %v4886_v59 = vsub.s32 2, %v4862_v39 }
  0xea   : > { %1346 = vmatpush1.bf16.msra.mxu0 %v3900_v28  ;;  %v3996_v28 = vld [vmem:[#allocation11 + $0xa8] ss:$16 sps:$4 sm:$0xff]  }
  0xeb   : > { %1347 = vmatprep.subr.bf16.mxu0 %v3905_v29  ;;  %1389 = vmatpush1.bf16.msra.mxu1 %v3972_v62  ;;  %v4001_v29 = vld [vmem:[#allocation11 + $0x8c] ss:$16 sps:$4 sm:$0xff]  }
  0xec   : > { %1390 = vmatprep.subr.bf16.mxu1 %v3977_v63 }
  0xee   : > { %1348 = vmatpush1.bf16.msra.mxu0 %v3903_v32  ;;  %v4485_v32 = vmov 0.0  }
  0xef   : > { %1349 = vmatprep.subr.bf16.mxu0 %v3908_v33  ;;  %1391 = vmatpush1.bf16.msra.mxu1 %v3975_v3  ;;  %v4002_v33 = vld [vmem:[#allocation11 + $0x68] ss:$16 sps:$4 sm:$0xff]  }
  0xf0   : > { %1392 = vmatprep.subr.bf16.mxu1 %v3980_v4 }
  0xf2   : > { %1350 = vmatpush1.bf16.msra.mxu0 %v3906_v36  ;;  %v4013_v36 = vld [vmem:[#allocation11 + $0xc] ss:$16 sps:$4 sm:$0xff]  }
  0xf3   : > { %1351 = vmatprep.subr.bf16.mxu0 %v3911_v37  ;;  %1393 = vmatpush1.bf16.msra.mxu1 %v3978_v7  ;;  %v4011_v37 = vld [vmem:[#allocation11 + $0x8] ss:$16 sps:$4 sm:$0xff]  }
  0xf4   : > { %1394 = vmatprep.subr.bf16.mxu1 %v3983_v8 }
  0xf6   : > { %1352 = vmatpush1.bf16.msra.mxu0 %v3909_v40  ;;  %v861_v40 = vsub.s32 1, %v4862_v39 }
  0xf7   : > { %1353 = vmatprep.subr.bf16.mxu0 %v3914_v41  ;;  %1395 = vmatpush1.bf16.msra.mxu1 %v3981_v11  ;;  %v4868_v41 = vld [vmem:[%s5193_s2] sm:$0xf]  ;;  %s5201_s2 = sld [smem:[#allocation50_spill]] }
  0xf8   : > { %1396 = vmatprep.subr.bf16.mxu1 %v3986_v12  ;;  %v4871_v42 = vrot.slane %v4868_v41, %v861_v40  ;;  %v1168_v62 = vrot.slane %v1159_v58, %v861_v40 }
  0xfa   : > { %1354 = vmatpush1.bf16.msra.mxu0 %v3912_v44  ;;  %v853_v44 = vld [vmem:[%s5123_s6] sm:$0xf] }
  0xfb   : > { %1355 = vmatprep.subr.bf16.mxu0 %v3917_v45  ;;  %1397 = vmatpush1.bf16.msra.mxu1 %v3984_v15  ;;  %v858_v45 = vrot.slane %v853_v44, %v857_v43  ;;  %v862_v46 = vrot.slane %v853_v44, %v861_v40  ;;  %v866_v63 = vrot.slane %v853_v44, %v4886_v59 }
  0xfc   : > { %1398 = vmatprep.subr.bf16.mxu1 %v3989_v16 }
  0xfe   : > { %1356 = vmatpush1.bf16.msra.mxu0 %v3915_v48 }
  0xff   : > { %1700 = vmatprep.subr.bf16.mxu0 %v3920_v49  ;;  %1399 = vmatpush1.bf16.msra.mxu1 %v3987_v21 }
 0x100   : > { %1743 = vmatprep.subr.bf16.mxu1 %v3992_v22 }
 0x101   : > { %1374 = vmatmul.mubr.bf16.vlgmr.msra.gmra.mxu0 %v4841_v18 }
 0x102   : > { %1701 = vmatpush1.bf16.msra.mxu0 %v3918_v51  ;;  %1732 = vmatprep.mubr.bf16.mxu0 %v4484_v0 }
 0x103   : > { %1702 = vmatprep.subr.bf16.mxu0 %v3923_v53  ;;  %1417 = vmatmul.mubr.bf16.vlgmr.msra.gmra.mxu1 %v4841_v18  ;;  %v4007_v18 = vld [vmem:[#allocation11 + $0x4c] ss:$16 sps:$4 sm:$0xff]  }
 0x104   : > { %1744 = vmatpush1.bf16.msra.mxu1 %v3990_v24  ;;  %1775 = vmatprep.mubr.bf16.mxu1 %v4484_v0  ;;  %v4010_v0 = vld [vmem:[#allocation11 + $0x2c] ss:$16 sps:$4 sm:$0xff]  }
 0x105   : > { %1745 = vmatprep.subr.bf16.mxu1 %v3995_v25 }
 0x106   : > { %1703 = vmatpush1.bf16.msra.mxu0 %v3921_v56 }
 0x107   : > { %1704 = vmatprep.subr.bf16.mxu0 %v3926_v57 }
 0x108   : > { %1746 = vmatpush1.bf16.msra.mxu1 %v3993_v26  ;;  %v1523_v26 = vrot.slane %v4868_v41, %v857_v43 }
 0x109   : > { %1747 = vmatprep.subr.bf16.mxu1 %v3998_v27  ;;  %v1172_v27 = vrot.slane %v1159_v58, %v4886_v59 }
 0x10a   : > { %1705 = vmatpush1.bf16.msra.mxu0 %v3924_v60  ;;  %v1164_v60 = vrot.slane %v1159_v58, %v857_v43 }
 0x10b   : > { %1706 = vmatprep.subr.bf16.mxu0 %v3929_v61  ;;  %v4889_v61 = vsub.s32 3, %v4862_v39 }
 0x10c   : > { %1748 = vmatpush1.bf16.msra.mxu1 %v3996_v28 }
 0x10d   : > { %1749 = vmatprep.subr.bf16.mxu1 %v4001_v29  ;;  %v870_v3 = vrot.slane %v853_v44, %v4889_v61  ;;  %v1176_v29 = vrot.slane %v1159_v58, %v4889_v61 }
 0x10e   : > { %1707 = vmatpush1.bf16.msra.mxu0 %v3927_v1 }
 0x10f   : > { %1708 = vmatprep.subr.bf16.mxu0 %v3932_v2 }
 0x110   : > { %1750 = vmatpush1.bf16.msra.mxu1 %v3999_v30 }
 0x111   : > { %1751 = vmatprep.subr.bf16.mxu1 %v4004_v31 }
 0x112   : > { %1709 = vmatpush1.bf16.msra.mxu0 %v3930_v5 }
 0x113   : > { %1710 = vmatprep.subr.bf16.mxu0 %v3935_v6 }
 0x114   : > { %1752 = vmatpush1.bf16.msra.mxu1 %v4002_v33 }
 0x115   : > { %1753 = vmatprep.subr.bf16.mxu1 %v4007_v18 }
 0x116   : > { %1711 = vmatpush1.bf16.msra.mxu0 %v3933_v9 }
 0x117   : > { %1712 = vmatprep.subr.bf16.mxu0 %v3938_v10 }
 0x118   : > { %1754 = vmatpush1.bf16.msra.mxu1 %v4005_v34 }
 0x119   : > { %1755 = vmatprep.subr.bf16.mxu1 %v4010_v0 }
 0x11a   : > { %1713 = vmatpush1.bf16.msra.mxu0 %v3936_v13 }
 0x11b   : > { %1714 = vmatprep.subr.bf16.mxu0 %v3941_v14 }
 0x11c   : > { %1756 = vmatpush1.bf16.msra.mxu1 %v4008_v35 }
 0x11d   : > { %1757 = vmatprep.subr.bf16.mxu1 %v4013_v36 }
 0x11e   : > { %1715 = vmatpush1.bf16.msra.mxu0 %v3939_v17 }
 0x11f   : > { %3635 = vmatprep.subr.bf16.mxu0 %v4485_v32 }
 0x120   : > { %1758 = vmatpush1.bf16.msra.mxu1 %v4011_v37 }
 0x121   : > { %1733 = vmatmul.mubr.bf16.vlgmr.msra.gmra.mxu0 %v1485_v23  ;;  %3611 = vmatprep.subr.bf16.mxu1 %v4485_v32 }
 0x122   : > { %3637 = vmatprep.mubr.msk.bf16.mxu0 %vm4486_vm0, %v4485_v32 }
 0x123   : > { %1776 = vmatmul.mubr.bf16.vlgmr.msra.gmra.mxu1 %v1485_v23 }
 0x124   : > { %3613 = vmatprep.mubr.msk.bf16.mxu1 %vm4486_vm0, %v4485_v32 }
 0x1a1   : > { %v1075_v47 = vpop.f32.mrf.mxu0  ;;  %v1118_v5 = vpop.f32.mrf.mxu1 }
 0x1a2   : > { %v1076_v48 = vadd.f32 %v1075_v47, %v858_v45  ;;  %v1119_v7 = vadd.f32 %v1118_v5, %v866_v63 }
 0x1a3   : > { %v1077_v49 = vpop.f32.mrf.mxu0  ;;  %v1120_v9 = vpop.f32.mrf.mxu1 }
 0x1a4   : > { %v1078_v50 = vadd.f32 %v1077_v49, %v862_v46  ;;  %v1121_v11 = vadd.f32 %v1120_v9, %v870_v3 }
 0x1a5   : > { %v1079_v51 = vpop.f32.mrf.mxu0  ;;  %v1122_v13 = vpop.f32.mrf.mxu1 }
 0x1a6   : > { %v3515_v52 = vpack.c.bf16 %v1078_v50, %v1076_v48  ;;  %v1080_v54 = vadd.f32 %v1079_v51, %v858_v45  ;;  %v3516_v16 = vpack.c.bf16 %v1121_v11, %v1119_v7  ;;  %v1123_v17 = vadd.f32 %v1122_v13, %v866_v63 }
 0x1a7   : > { %v1081_v53 = vpop.f32.mrf.mxu0  ;;  %v1124_v21 = vpop.f32.mrf.mxu1  ;;  %v1802_v11 = vadd.s32 8, %v4862_v39 }
 0x1a8   : > { %1451 = vst [vmem:[#allocation2] sm:$0xff] %v3515_v52  ;;  %v1082_v55 = vadd.f32 %v1081_v53, %v862_v46  ;;  %1452 = vst [vmem:[#allocation2 + $0x8] sm:$0xff] %v3516_v16  ;;  %v1125_v23 = vadd.f32 %v1124_v21, %v870_v3 }
 0x1aa   : > { %v3517_v56 = vpack.c.bf16 %v1082_v55, %v1080_v54  ;;  %v3518_v24 = vpack.c.bf16 %v1125_v23, %v1123_v17 }
 0x1ac   : > { %1453 = vst [vmem:[#allocation2 + $0x10] sm:$0xff] %v3517_v56  ;;  %1454 = vst [vmem:[#allocation2 + $0x18] sm:$0xff] %v3518_v24 }
 0x1b3   : > { %v4014_v57 = vld [vmem:[#allocation2] ss:$16 sps:$4 sm:$0xff]   ;;  %v4016_v25 = vld [vmem:[#allocation2 + $0x8] ss:$16 sps:$4 sm:$0xff]   ;;  %v4017_v7 = vld [vmem:[#allocation2 + $0xc] ss:$16 sps:$4 sm:$0xff]  }
 0x1b4   : > { %3612 = vmatpush3.bf16.xpose.msra.mxu1 %v4014_v57  ;;  %3636 = vmatpush3.bf16.xpose.msra.mxu0 %v4016_v25 }
 0x1b5   : > { %3617 = vmatprep.subr.bf16.mxu1 %v4485_v32  ;;  %3647 = vmatprep.subr.bf16.mxu0 %v4485_v32 }
 0x1c1   : > { %v1375_v1 = vpop.f32.mrf.mxu0 }
 0x1c2   : > { %v1376_v2 = vadd.f32 %v1375_v1, %v1164_v60 }
 0x1c3   : > { %v1377_v4 = vpop.f32.mrf.mxu0  ;;  %v1418_v33 = vpop.f32.mrf.mxu1 }
 0x1c4   : > { %v1378_v6 = vadd.f32 %v1377_v4, %v1168_v62  ;;  %v1419_v34 = vadd.f32 %v1418_v33, %v1172_v27 }
 0x1c5   : > { %v1379_v8 = vpop.f32.mrf.mxu0  ;;  %v1420_v35 = vpop.f32.mrf.mxu1 }
 0x1c6   : > { %v3519_v10 = vpack.c.bf16 %v1378_v6, %v1376_v2  ;;  %v1380_v14 = vadd.f32 %v1379_v8, %v1164_v60  ;;  %v1421_v37 = vadd.f32 %v1420_v35, %v1176_v29 }
 0x1c7   : > { %v1381_v12 = vpop.f32.mrf.mxu0  ;;  %v1422_v45 = vpop.f32.mrf.mxu1 }
 0x1c8   : > { %1479 = vst [vmem:[#allocation3] sm:$0xff] %v3519_v10  ;;  %v1382_v15 = vadd.f32 %v1381_v12, %v1168_v62  ;;  %v3520_v47 = vpack.c.bf16 %v1421_v37, %v1419_v34  ;;  %v1423_v48 = vadd.f32 %v1422_v45, %v1172_v27  ;;  %v1535_v62 = vrot.slane %v4868_v41, %v4889_v61 }
 0x1c9   : > { %v1424_v49 = vpop.f32.mrf.mxu1  ;;  %v1810_v61 = vstv %s1798_s25 }
 0x1ca   : > { %v3521_v22 = vpack.c.bf16 %v1382_v15, %v1380_v14  ;;  %1480 = vst [vmem:[#allocation3 + $0x8] sm:$0xff] %v3520_v47  ;;  %v1425_v53 = vadd.f32 %v1424_v49, %v1176_v29 }
 0x1cc   : > { %1481 = vst [vmem:[#allocation3 + $0x10] sm:$0xff] %v3521_v22  ;;  %v3522_v56 = vpack.c.bf16 %v1425_v53, %v1423_v48  ;;  %v4018_v53 = vld [vmem:[#allocation2 + $0x4] ss:$16 sps:$4 sm:$0xff]  }
 0x1ce   : > { %1482 = vst [vmem:[#allocation3 + $0x18] sm:$0xff] %v3522_v56 }
 0x1d3   : > { %v4015_v54 = vld [vmem:[#allocation3] ss:$16 sps:$4 sm:$0xff]  }
 0x1e1   : > { %v1734_v28 = vpop.f32.mrf.mxu0 }
 0x1e2   : > { %v1735_v30 = vadd.f32 %v1734_v28, %v1523_v26 }
 0x1e3   : > { %v1736_v31 = vpop.f32.mrf.mxu0  ;;  %v1777_v57 = vpop.f32.mrf.mxu1 }
 0x1e4   : > { %v1737_v18 = vadd.f32 %v1736_v31, %v4871_v42  ;;  %v1786_v40 = vmul.f32 0.35355338, %v1735_v30 }
 0x1e5   : > { %v1738_v0 = vpop.f32.mrf.mxu0  ;;  %v1779_v60 = vpop.f32.mrf.mxu1 }
 0x1e6   : > { %v1739_v36 = vadd.f32 %v1738_v0, %v1523_v26  ;;  %v4899_v50 = vmul.f32 0.35355338, %v1737_v18  ;;  %v1780_v4 = vadd.f32 %v1779_v60, %v1535_v62 }
 0x1e7   : > { %v1740_v44 = vpop.f32.mrf.mxu0  ;;  %v1781_v63 = vpop.f32.mrf.mxu1 }
 0x1e8   : > { %v1790_v46 = vmul.f32 0.35355338, %v1739_v36  ;;  %v1741_v43 = vadd.f32 %v1740_v44, %v4871_v42  ;;  %v1531_v42 = vrot.slane %v4868_v41, %v4886_v59  ;;  %v1789_v9 = vmul.f32 0.35355338, %v1780_v4 }
 0x1e9   : > { %v1783_v3 = vpop.f32.mrf.mxu1  ;;  %v1807_v41 = vand.u32 127, %v855_v38 }
 0x1ea   : > { %v1794_v51 = vpack.c.bf16 %v1790_v46, %v1786_v40  ;;  %v4901_v52 = vmul.f32 0.35355338, %v1741_v43  ;;  %v1778_v58 = vadd.f32 %v1777_v57, %v1531_v42  ;;  %v1782_v2 = vadd.f32 %v1781_v63, %v1531_v42 }
 0x1eb   : > { %v1784_v6 = vadd.f32 %v1783_v3, %v1535_v62  ;;  %vm1808_vm1 = vcmp.le.s32.totalorder %v1807_v41, %v4862_v39  ;;  %vm1811_vm2 = vcmp.le.s32.totalorder %v1807_v41, %v1810_v61  ;;  %vm1809_vm5 = vcmp.le.s32.totalorder %v1807_v41, %v1802_v11 }
 0x1ec   : > { %v1795_v55 = vpack.c.bf16 %v4901_v52, %v4899_v50  ;;  %3614 = vmatmul.mubr.bf16.vlgmr.msra.gmra.mxu1 %v1794_v51  ;;  %v1788_v1 = vmul.f32 0.35355338, %v1778_v58  ;;  %v1792_v5 = vmul.f32 0.35355338, %v1782_v2  ;;  %vm4918_vm3 = vmand %vm1808_vm1, %vm1811_vm2 }
 0x1ed   : > { %3618 = vmatpush3.bf16.msra.mxu1 %v4015_v54  ;;  %3619 = vmatprep.mubr.msk.bf16.mxu1 %vm4486_vm0, %v4485_v32  ;;  %v1793_v10 = vmul.f32 0.35355338, %v1784_v6  ;;  %vm4925_vm6 = vmand %vm1809_vm5, %vm1811_vm2  ;;  %v4019_v54 = vld [vmem:[#allocation3 + $0x4] ss:$16 sps:$4 sm:$0xff]  }
 0x1ee   : > { %3623 = vmatprep.subr.bf16.mxu1 %v4485_v32  ;;  %v1796_v8 = vpack.c.bf16 %v1792_v5, %v1788_v1 }
 0x1ef   : > { %v1797_v59 = vpack.c.bf16 %v1793_v10, %v1789_v9 }
 0x1f0   : > { %3638 = vmatmul.mubr.bf16.vlgmr.msra.gmra.mxu0 %v1796_v8 }
 0x1f1   : > { %3648 = vmatpush3.bf16.xpose.msra.mxu0 %v4017_v7  ;;  %3649 = vmatprep.mubr.msk.bf16.mxu0 %vm4486_vm0, %v4485_v32 }
 0x1f8   : > { %3650 = vmatmul.mubr.bf16.vlgmr.msra.gmra.mxu0 %v1797_v59 }
 0x2ac   : > { %v1858_v13 = vpop.f32.mrf.mxu1 }
 0x2ad   : > { %v1865_v14 = vsel %vm4918_vm3, %v1858_v13, -1e+30 }
 0x2ae   : > { %v3615_v15 = vpop.f32.mrf.mxu1  ;;  %v1868_v16 = vsel %vm1867_vm4, %v1865_v14, -inf }
 0x2af   : > { %1869 = vmax.xlane.f32.xlu0 %v1868_v16 }
 0x2b0   : > { %v1861_v17 = vpop.f32.mrf.mxu1  ;;  %v2113_v23 = vpop.f32.mrf.mxu0 }
 0x2b1   : > { %v1866_v39 = vsel %vm4925_vm6, %v1861_v17, -1e+30  ;;  %v2120_v63 = vsel %vm4918_vm3, %v2113_v23, -1e+30 }
 0x2b2   : > { %v3616_v21 = vpop.f32.mrf.mxu1  ;;  %v1871_v22 = vsel %vm1867_vm4, %v1866_v39, -inf  ;;  %v3639_v24 = vpop.f32.mrf.mxu0  ;;  %v2122_v4 = vsel %vm1867_vm4, %v2120_v63, -inf }
 0x2b3   : > { %1872 = vmax.xlane.f32.xlu0 %v1871_v22 }
 0x2b4   : > { %v2116_v25 = vpop.f32.mrf.mxu0 }
 0x2b5   : > { %v2121_v6 = vsel %vm4925_vm6, %v2116_v25, -1e+30 }
 0x2b6   : > { %v3640_v26 = vpop.f32.mrf.mxu0  ;;  %v2125_v9 = vsel %vm1867_vm4, %v2121_v6, -inf }
 0x2b8   : > { %v2240_v27 = vpop.f32.mrf.mxu0 }
 0x2b9   : > { %v2247_v7 = vsel %vm4918_vm3, %v2240_v27, -1e+30 }
 0x2ba   : > { %v3651_v28 = vpop.f32.mrf.mxu0  ;;  %v2249_v8 = vsel %vm1867_vm4, %v2247_v7, -inf }
 0x2bc   : > { %v2243_v29 = vpop.f32.mrf.mxu0 }
 0x2bd   : > { %v2248_v10 = vsel %vm4925_vm6, %v2243_v29, -1e+30 }
 0x2be   : > { %v3652_v30 = vpop.f32.mrf.mxu0  ;;  %v2252_v59 = vsel %vm1867_vm4, %v2248_v10, -inf }
 0x338   : > { %v1870_v31 = vpop.xlane.xlu0 %1869 }
 0x339   : > { %v1874_v33 = vsub.f32 %v1865_v14, %v1870_v31 }
 0x33b   : > { %v1876_v18 = vmul.f32 1.442695, %v1874_v33 }
 0x33c   : > { %v1873_v34 = vpop.xlane.xlu0 %1872 }
 0x33d   : > { %4078 = vpow2.f32 %v1876_v18  ;;  %v1875_v0 = vsub.f32 %v1866_v39, %v1873_v34 }
 0x33f   : > { %v1878_v35 = vmul.f32 1.442695, %v1875_v0 }
 0x341   : > { %4080 = vpow2.f32 %v1878_v35 }
 0x34a   : > { %v4079_v36 = vpop.eup %4078 }
 0x34b   : > { %v1880_v37 = vsel %vm1867_vm4, %v4079_v36, 0.0 }
 0x34c   : > { %1881 = vadd.xlane.f32.xlu1 %v1880_v37 }
 0x34e   : > { %v4081_v40 = vpop.eup %4080 }
 0x34f   : > { %v1883_v44 = vsel %vm1867_vm4, %v4081_v40, 0.0 }
 0x350   : > { %1884 = vadd.xlane.f32.xlu1 %v1883_v44  ;;  %v4022_v44 = vld [vmem:[#allocation15 + $0x78] sm:$0xff]  }
 0x351   : > { %3540 = vmatprep.subr.bf16.mxu0 %v4022_v44 }
 0x3d5   : > { %v1882_v45 = vpop.xlane.xlu1 %1881 }
 0x3d6   : > { %4082 = vrcp.f32 %v1882_v45  ;;  %v4023_v45 = vld [vmem:[#allocation15 + $0x38] sm:$0xff]  }
 0x3d7   : > { %3541 = vmatpush3.bf16.msra.mxu0 %v4023_v45 }
 0x3d9   : > { %v1885_v46 = vpop.xlane.xlu1 %1884 }
 0x3da   : > { %4084 = vrcp.f32 %v1885_v46  ;;  %v4024_v46 = vld [vmem:[#allocation15 + $0x70] sm:$0xff]  }
 0x3db   : > { %3542 = vmatprep.subr.bf16.mxu0 %v4024_v46 }
 0x3e3   : > { %v4083_v43 = vpop.eup %4082 }
 0x3e4   : > { %v1887_v48 = vmul.f32 %v4083_v43, %v4079_v36  ;;  %v4025_v43 = vld [vmem:[#allocation15 + $0x30] sm:$0xff]  }
 0x3e5   : > { %3543 = vmatpush3.bf16.msra.mxu0 %v4025_v43 }
 0x3e7   : > { %v4085_v47 = vpop.eup %4084 }
 0x3e8   : > { %v1889_v49 = vmul.f32 %v4085_v47, %v4081_v40  ;;  %v4026_v47 = vld [vmem:[#allocation15 + $0x68] sm:$0xff]  }
 0x3e9   : > { %3544 = vmatprep.subr.bf16.mxu0 %v4026_v47 }
 0x3ea   : > { %v1890_v51 = vpack.c.bf16 %v1889_v49, %v1887_v48  ;;  %v4027_v48 = vld [vmem:[#allocation15 + $0x28] sm:$0xff]   ;;  %v4028_v49 = vld [vmem:[#allocation15 + $0x60] sm:$0xff]  }
 0x3eb   : > { %3545 = vmatpush3.bf16.msra.mxu0 %v4027_v48 }
 0x3ec   : > { %3620 = vmatmul.mubr.msk.bf16.vlgmr.msra.gmra.mxu1 %vm1867_vm4, %v1890_v51  ;;  %v4029_v51 = vld [vmem:[#allocation15 + $0x20] sm:$0xff]   ;;  %3546 = vmatprep.subr.bf16.mxu0 %v4028_v49 }
 0x3ed   : > { %3624 = vmatpush3.bf16.xpose.msra.mxu1 %v4018_v53  ;;  %3625 = vmatprep.mubr.msk.bf16.mxu1 %vm4486_vm0, %v4485_v32  ;;  %v4030_v53 = vld [vmem:[#allocation15 + $0x58] sm:$0xff]  }
 0x3ee   : > { %3629 = vmatprep.subr.bf16.mxu1 %v4485_v32 }
 0x3ef   : > { %3547 = vmatpush3.bf16.msra.mxu0 %v4029_v51 }
 0x3f0   : > { %3548 = vmatprep.subr.bf16.mxu0 %v4030_v53 }
 0x3f4   : > { %3626 = vmatmul.mubr.bf16.vlgmr.msra.gmra.mxu1 %v1795_v55 }
 0x3f5   : > { %3630 = vmatpush3.bf16.msra.mxu1 %v4019_v54  ;;  %3631 = vmatprep.mubr.msk.bf16.mxu1 %vm4486_vm0, %v4485_v32  ;;  %v4032_v54 = vld [vmem:[#allocation15 + $0x18] sm:$0xff]  }
 0x3f6   : > { %3641 = vmatprep.subr.bf16.mxu1 %v4485_v32  ;;  %3549 = vmatpush3.bf16.msra.mxu0 %v4032_v54 }
 0x4ac   : > { %v4944_v56 = vpop.f32.mrf.mxu1 }
 0x4ae   : > { %v3621_v42 = vpop.f32.mrf.mxu1 }
 0x4af   : > { %v4034_v42 = vld [vmem:[#allocation15 + $0x50] sm:$0xff]  }
 0x4b0   : > { %v4946_v57 = vpop.f32.mrf.mxu1  ;;  %3550 = vmatprep.subr.bf16.mxu0 %v4034_v42 }
 0x4b1   : > { %v1941_v58 = vpack.c.bf16 %v4946_v57, %v4944_v56 }
 0x4b2   : > { %v3622_v60 = vpop.f32.mrf.mxu1 }
 0x4b3   : > { %v4036_v60 = vld [vmem:[#allocation15 + $0x10] sm:$0xff]  }
 0x4b4   : > { %v1986_v62 = vpop.f32.mrf.mxu1  ;;  %3551 = vmatpush3.bf16.msra.mxu0 %v4036_v60 }
 0x4b5   : > { %v1993_v50 = vsel %vm4918_vm3, %v1986_v62, -1e+30 }
 0x4b6   : > { %v3627_v52 = vpop.f32.mrf.mxu1  ;;  %v1995_v55 = vsel %vm1867_vm4, %v1993_v50, -inf }
 0x4b7   : > { %1996 = vmax.xlane.f32.xlu0 %v1995_v55 }
 0x4b8   : > { %v1989_v1 = vpop.f32.mrf.mxu1 }
 0x4b9   : > { %v1994_v2 = vsel %vm4925_vm6, %v1989_v1, -1e+30 }
 0x4ba   : > { %v3628_v3 = vpop.f32.mrf.mxu1  ;;  %v1998_v5 = vsel %vm1867_vm4, %v1994_v2, -inf }
 0x4bb   : > { %2123 = vmax.xlane.f32.xlu0 %v2122_v4  ;;  %1999 = vmax.xlane.f32.xlu1 %v1998_v5 }
 0x4bf   : > { %2250 = vmax.xlane.f32.xlu0 %v2249_v8  ;;  %2126 = vmax.xlane.f32.xlu1 %v2125_v9  ;;  %v4020_v8 = vld [vmem:[#allocation3 + $0x8] ss:$16 sps:$4 sm:$0xff]  }
 0x4c3   : > { %2253 = vmax.xlane.f32.xlu1 %v2252_v59 }
 0x540   : > { %v1997_v41 = vpop.xlane.xlu0 %1996 }
 0x541   : > { %v2001_v61 = vsub.f32 %v1993_v50, %v1997_v41 }
 0x543   : > { %v2003_v11 = vmul.f32 1.442695, %v2001_v61  ;;  %v4031_v61 = vld [vmem:[#allocation15 + $0xf8] sm:$0xff]  }
 0x544   : > { %v2124_v13 = vpop.xlane.xlu0 %2123  ;;  %v2000_v12 = vpop.xlane.xlu1 %1999 }
 0x545   : > { %4086 = vpow2.f32 %v2003_v11  ;;  %v2128_v14 = vsub.f32 %v2120_v63, %v2124_v13  ;;  %v2002_v15 = vsub.f32 %v1994_v2, %v2000_v12  ;;  %v4021_v13 = vld [vmem:[#allocation3 + $0xc] ss:$16 sps:$4 sm:$0xff]  }
 0x547   : > { %v2130_v16 = vmul.f32 1.442695, %v2128_v14  ;;  %v2005_v17 = vmul.f32 1.442695, %v2002_v15 }
 0x548   : > { %v2251_v39 = vpop.xlane.xlu0 %2250  ;;  %v2127_v21 = vpop.xlane.xlu1 %2126 }
 0x549   : > { %4088 = vpow2.f32 %v2130_v16  ;;  %v2255_v38 = vsub.f32 %v2247_v7, %v2251_v39  ;;  %v2129_v22 = vsub.f32 %v2121_v6, %v2127_v21  ;;  %v4033_v16 = vld [vmem:[#allocation15 + $0xb8] sm:$0xff]   ;;  %v4035_v39 = vld [vmem:[#allocation15 + $0xf0] sm:$0xff]  }
 0x54a   : > { %4090 = vpow2.f32 %v2005_v17  ;;  %v4037_v21 = vld [vmem:[#allocation15 + $0xb0] sm:$0xff]  }
 0x54b   : > { %v2257_v23 = vmul.f32 1.442695, %v2255_v38  ;;  %v2132_v24 = vmul.f32 1.442695, %v2129_v22  ;;  %v4038_v38 = vld [vmem:[#allocation15 + $0x48] sm:$0xff]  }
 0x54c   : > { %v2254_v25 = vpop.xlane.xlu1 %2253  ;;  %v4039_v22 = vld [vmem:[#allocation15 + $0xe8] sm:$0xff]   ;;  %3552 = vmatprep.subr.bf16.mxu0 %v4038_v38  ;;  %v4065_v38 = vld [vmem:[#allocation18 + $0x20] sm:$0xff]  }
 0x54d   : > { %4092 = vpow2.f32 %v2257_v23  ;;  %v2256_v26 = vsub.f32 %v2248_v10, %v2254_v25  ;;  %v4040_v23 = vld [vmem:[#allocation15 + $0x8] sm:$0xff]   ;;  %v4042_v25 = vld [vmem:[#allocation15 + $0x40] sm:$0xff]  }
 0x54e   : > { %4094 = vpow2.f32 %v2132_v24  ;;  %v4041_v24 = vld [vmem:[#allocation15 + $0xa8] sm:$0xff]   ;;  %3553 = vmatpush3.bf16.msra.mxu0 %v4040_v23 }
 0x54f   : > { %v2259_v27 = vmul.f32 1.442695, %v2256_v26  ;;  %v4043_v26 = vld [vmem:[#allocation15 + $0xe0] sm:$0xff]   ;;  %3554 = vmatprep.subr.bf16.mxu0 %v4042_v25 }
 0x551   : > { %4096 = vpow2.f32 %v2259_v27  ;;  %v4044_v27 = vld [vmem:[#allocation15] sm:$0xff]  }
 0x552   : > { %v4087_v28 = vpop.eup %4086  ;;  %3555 = vmatpush3.bf16.msra.mxu0 %v4044_v27 }
 0x553   : > { %v2007_v29 = vsel %vm1867_vm4, %v4087_v28, 0.0  ;;  %3659 = vmatprep.subr.bf16.mxu0 %v4485_v32 }
 0x554   : > { %2008 = vadd.xlane.f32.xlu0 %v2007_v29  ;;  %v4046_v29 = vld [vmem:[#allocation15 + $0xd8] sm:$0xff]  }
 0x556   : > { %v4969_v30 = vpop.eup %4088 }
 0x557   : > { %v4091_v31 = vpop.eup %4090  ;;  %v2134_v33 = vsel %vm1867_vm4, %v4969_v30, 0.0 }
 0x558   : > { %2135 = vadd.xlane.f32.xlu0 %v2134_v33  ;;  %v2010_v18 = vsel %vm1867_vm4, %v4091_v31, 0.0  ;;  %v4049_v33 = vld [vmem:[#allocation15 + $0x90] sm:$0xff]  }
 0x559   : > { %2011 = vadd.xlane.f32.xlu1 %v2010_v18  ;;  %v4050_v18 = vld [vmem:[#allocation15 + $0xc8] sm:$0xff]  }
 0x55a   : > { %v4974_v34 = vpop.eup %4092 }
 0x55b   : > { %v4095_v0 = vpop.eup %4094  ;;  %v2261_v35 = vsel %vm1867_vm4, %v4974_v34, 0.0 }
 0x55c   : > { %2262 = vadd.xlane.f32.xlu0 %v2261_v35  ;;  %v2137_v36 = vsel %vm1867_vm4, %v4095_v0, 0.0  ;;  %v4053_v35 = vld [vmem:[#allocation15 + $0x80] sm:$0xff]  }
 0x55d   : > { %2138 = vadd.xlane.f32.xlu1 %v2137_v36 }
 0x55e   : > { %v4097_v37 = vpop.eup %4096 }
 0x55f   : > { %v2264_v40 = vsel %vm1867_vm4, %v4097_v37, 0.0 }
 0x561   : > { %2265 = vadd.xlane.f32.xlu1 %v2264_v40 }
 0x5dd   : > { %v2009_v62 = vpop.xlane.xlu0 %2008 }
 0x5de   : > { %4098 = vrcp.f32 %v2009_v62 }
 0x5e1   : > { %v2136_v52 = vpop.xlane.xlu0 %2135 }
 0x5e2   : > { %v2012_v50 = vpop.xlane.xlu1 %2011 }
 0x5e3   : > { %4100 = vrcp.f32 %v2012_v50  ;;  %v3444_v50 = vld [vmem:[%s5127_s10] ss:$0 sm:$0xff] }
 0x5e5   : > { %v2263_v2 = vpop.xlane.xlu0 %2262 }
 0x5e6   : > { %v2139_v55 = vpop.xlane.xlu1 %2138 }
 0x5e7   : > { %4102 = vrcp.f32 %v2139_v55 }
 0x5e8   : > { %4104 = vrcp.f32 %v2136_v52 }
 0x5ea   : > { %v2266_v63 = vpop.xlane.xlu1 %2265 }
 0x5eb   : > { %v4099_v1 = vpop.eup %4098  ;;  %4106 = vrcp.f32 %v2266_v63 }
 0x5ec   : > { %4108 = vrcp.f32 %v2263_v2  ;;  %v2014_v4 = vmul.f32 %v4099_v1, %v4087_v28  ;;  %v4045_v28 = vld [vmem:[#allocation15 + $0xa0] sm:$0xff]  }
 0x5f0   : > { %v4101_v3 = vpop.eup %4100 }
 0x5f1   : > { %v2016_v5 = vmul.f32 %v4101_v3, %v4091_v31  ;;  %v4048_v31 = vld [vmem:[#allocation15 + $0xd0] sm:$0xff]  }
 0x5f3   : > { %v2017_v6 = vpack.c.bf16 %v2016_v5, %v2014_v4 }
 0x5f4   : > { %v4103_v7 = vpop.eup %4102 }
 0x5f5   : > { %3632 = vmatmul.mubr.msk.bf16.vlgmr.msra.gmra.mxu1 %vm1867_vm4, %v2017_v6  ;;  %v4105_v9 = vpop.eup %4104  ;;  %v2143_v10 = vmul.f32 %v4103_v7, %v4095_v0  ;;  %v4052_v0 = vld [vmem:[#allocation15 + $0xc0] sm:$0xff]  }
 0x5f6   : > { %3642 = vmatpush3.bf16.msra.mxu1 %v4020_v8  ;;  %3643 = vmatprep.mubr.msk.bf16.mxu1 %vm4486_vm0, %v4485_v32  ;;  %v2141_v59 = vmul.f32 %v4105_v9, %v4969_v30  ;;  %v4047_v30 = vld [vmem:[#allocation15 + $0x98] sm:$0xff]  }
 0x5f7   : > { %3653 = vmatprep.subr.bf16.mxu1 %v4485_v32 }
 0x5f8   : > { %v2144_v41 = vpack.c.bf16 %v2143_v10, %v2141_v59  ;;  %v4107_v11 = vpop.eup %4106 }
 0x5f9   : > { %v4109_v12 = vpop.eup %4108  ;;  %v2270_v14 = vmul.f32 %v4107_v11, %v4097_v37  ;;  %v4054_v11 = vld [vmem:[#allocation17 + $0x38] sm:$0xff]  }
 0x5fa   : > { %v2268_v15 = vmul.f32 %v4109_v12, %v4974_v34  ;;  %v4051_v34 = vld [vmem:[#allocation15 + $0x88] sm:$0xff]   ;;  %v4058_v12 = vld [vmem:[#allocation17 + $0x18] sm:$0xff]  }
 0x5fc   : > { %v2271_v17 = vpack.c.bf16 %v2270_v14, %v2268_v15  ;;  %v4059_v14 = vld [vmem:[#allocation17 + $0x10] sm:$0xff]   ;;  %v4060_v15 = vld [vmem:[#allocation17 + $0x8] sm:$0xff]  }
 0x5fd   : > { %3644 = vmatmul.mubr.msk.bf16.vlgmr.msra.gmra.mxu1 %vm1867_vm4, %v2144_v41 }
 0x5fe   : > { %3654 = vmatpush3.bf16.msra.mxu1 %v4021_v13  ;;  %3655 = vmatprep.mubr.msk.bf16.mxu1 %vm4486_vm0, %v4485_v32  ;;  %v4057_v13 = vld [vmem:[#allocation17 + $0x20] sm:$0xff]  }
 0x5ff   : > { %3562 = vmatprep.subr.bf16.mxu1 %v4031_v61 }
 0x605   : > { %3656 = vmatmul.mubr.msk.bf16.vlgmr.msra.gmra.mxu1 %vm1867_vm4, %v2271_v17  ;;  %v4062_v17 = vld [vmem:[#allocation18 + $0x38] sm:$0xff]  }
 0x606   : > { %3563 = vmatpush3.bf16.msra.mxu1 %v4033_v16  ;;  %v4061_v16 = vld [vmem:[#allocation17] sm:$0xff]  }
 0x607   : > { %3564 = vmatprep.subr.bf16.mxu1 %v4035_v39  ;;  %v4063_v39 = vld [vmem:[#allocation18 + $0x30] sm:$0xff]  }
 0x60a   : > { %3565 = vmatpush3.bf16.msra.mxu1 %v4037_v21  ;;  %v4064_v21 = vld [vmem:[#allocation18 + $0x28] sm:$0xff]  }
 0x60b   : > { %3566 = vmatprep.subr.bf16.mxu1 %v4039_v22  ;;  %v4066_v22 = vld [vmem:[#allocation18 + $0x18] sm:$0xff]  }
 0x60e   : > { %3567 = vmatpush3.bf16.msra.mxu1 %v4041_v24 }
 0x60f   : > { %3568 = vmatprep.subr.bf16.mxu1 %v4043_v26 }
 0x612   : > { %3569 = vmatpush3.bf16.msra.mxu1 %v4045_v28 }
 0x613   : > { %3570 = vmatprep.subr.bf16.mxu1 %v4046_v29 }
 0x616   : > { %3571 = vmatpush3.bf16.msra.mxu1 %v4047_v30 }
 0x617   : > { %3572 = vmatprep.subr.bf16.mxu1 %v4048_v31 }
 0x61a   : > { %3573 = vmatpush3.bf16.msra.mxu1 %v4049_v33 }
 0x61b   : > { %3574 = vmatprep.subr.bf16.mxu1 %v4050_v18 }
 0x61e   : > { %3575 = vmatpush3.bf16.msra.mxu1 %v4051_v34 }
 0x61f   : > { %3576 = vmatprep.subr.bf16.mxu1 %v4052_v0 }
 0x622   : > { %3577 = vmatpush3.bf16.msra.mxu1 %v4053_v35 }
 0x623   : > { %3679 = vmatprep.subr.bf16.mxu1 %v4485_v32 }
 0x6b5   : > { %v2061_v36 = vpop.f32.mrf.mxu1 }
 0x6b7   : > { %v3633_v37 = vpop.f32.mrf.mxu1 }
 0x6b9   : > { %v2064_v40 = vpop.f32.mrf.mxu1 }
 0x6ba   : > { %v2068_v44 = vpack.c.bf16 %v2064_v40, %v2061_v36 }
 0x6bb   : > { %v3634_v45 = vpop.f32.mrf.mxu1 }
 0x6bc   : > { %2618 = vmatprep.mubr.bf16.mxu0 %v2068_v44 }
 0x6bd   : > { %v2188_v46 = vpop.f32.mrf.mxu1  ;;  %2619 = vmatmul.mubr.bf16.vlgmr.msra.gmra.mxu0 %v1941_v58 }
 0x6be   : > { %3675 = vmatprep.mubr.msk.bf16.mxu0 %vm4486_vm0, %v4485_v32  ;;  %3660 = vmatpush3.bf16.msra.mxu0 %v4054_v11  ;;  %v3488_v11 = vld [vmem:[%s5200_s26] ss:$0 sm:$0xff] }
 0x6bf   : > { %v3645_v43 = vpop.f32.mrf.mxu1  ;;  %3661 = vmatprep.subr.bf16.mxu0 %v4485_v32 }
 0x6c1   : > { %v2191_v47 = vpop.f32.mrf.mxu1 }
 0x6c2   : > { %v2195_v42 = vpack.c.bf16 %v2191_v47, %v2188_v46  ;;  %v3477_v46 = vld [vmem:[%s5128_s11] ss:$0 sm:$0xff] }
 0x6c3   : > { %v3646_v48 = vpop.f32.mrf.mxu1 }
 0x6c5   : > { %v2315_v49 = vpop.f32.mrf.mxu1 }
 0x6c7   : > { %v3657_v51 = vpop.f32.mrf.mxu1 }
 0x6c8   : > { %v3478_v51 = vld [vmem:[%s5198_s13] ss:$0 sm:$0xff]  ;;  %s5204_s13 = sld [smem:[#allocation53_spill]] }
 0x6c9   : > { %v2318_v53 = vpop.f32.mrf.mxu1 }
 0x6ca   : > { %v2322_v54 = vpack.c.bf16 %v2318_v53, %v2315_v49 }
 0x6cb   : > { %v3658_v60 = vpop.f32.mrf.mxu1 }
 0x6cc   : > { %2659 = vmatprep.mubr.bf16.mxu1 %v2322_v54 }
 0x6cd   : > { %2660 = vmatmul.mubr.bf16.vlgmr.msra.gmra.mxu1 %v2195_v42 }
 0x6ce   : > { %3695 = vmatprep.mubr.msk.bf16.mxu1 %vm4486_vm0, %v4485_v32  ;;  %3680 = vmatpush3.bf16.msra.mxu1 %v4062_v17  ;;  %s5067_s17 = scalar_lea.hbm %s5204_s13, %s3523_s9 }
 0x6cf   : > { %3681 = vmatprep.subr.bf16.mxu1 %v4485_v32 }
 0x6d2   : > { %3682 = vmatpush3.bf16.msra.mxu1 %v4063_v39 }
 0x6d3   : > { %3683 = vmatprep.subr.bf16.mxu1 %v4485_v32 }
 0x6d6   : > { %3684 = vmatpush3.bf16.msra.mxu1 %v4064_v21 }
 0x6d7   : > { %3685 = vmatprep.subr.bf16.mxu1 %v4485_v32 }
 0x6da   : > { %3686 = vmatpush3.bf16.msra.mxu1 %v4065_v38 }
 0x6db   : > { %3687 = vmatprep.subr.bf16.mxu1 %v4485_v32 }
 0x6de   : > { %3688 = vmatpush3.bf16.msra.mxu1 %v4066_v22 }
 0x6df   : > { %3689 = vmatprep.subr.bf16.mxu1 %v4485_v32 }
 0x77d   : > { %v3556_v62 = vpop.f32.mrf.mxu0 }
 0x77f   : > { %v3557_v56 = vpop.f32.mrf.mxu0 }
 0x780   : > { %v3558_v58 = vadd.f32 %v3557_v56, %v3556_v62  ;;  %v4067_v62 = vld [vmem:[#allocation18 + $0x10] sm:$0xff]   ;;  %v4068_v56 = vld [vmem:[#allocation18 + $0x8] sm:$0xff]  }
 0x781   : > { %v3559_v57 = vpop.f32.mrf.mxu0  ;;  %3690 = vmatpush3.bf16.msra.mxu1 %v4067_v62 }
 0x782   : > { %v2621_v1 = vadd.f32 %v3558_v58, %v3444_v50  ;;  %3691 = vmatprep.subr.bf16.mxu1 %v4485_v32  ;;  %v4070_v58 = vld [vmem:[#allocation20 + $0x38] sm:$0xff]  }
 0x783   : > { %v3560_v52 = vpop.f32.mrf.mxu0 }
 0x784   : > { %v3561_v2 = vadd.f32 %v3560_v52, %v3559_v57  ;;  %v4069_v57 = vld [vmem:[#allocation18] sm:$0xff]   ;;  %v4072_v52 = vld [vmem:[#allocation20 + $0x28] sm:$0xff]  }
 0x785   : > { %3692 = vmatpush3.bf16.msra.mxu1 %v4068_v56 }
 0x786   : > { %v2624_v7 = vadd.f32 %v3561_v2, %v3444_v50  ;;  %3693 = vmatprep.subr.bf16.mxu1 %v4485_v32  ;;  %v4071_v50 = vld [vmem:[#allocation20 + $0x30] sm:$0xff]  }
 0x789   : > { %3694 = vmatpush3.bf16.msra.mxu1 %v4069_v57 }
 0x78d   : > { %v3578_v55 = vpop.f32.mrf.mxu1 }
 0x78f   : > { %v3579_v63 = vpop.f32.mrf.mxu1 }
 0x790   : > { %v3580_v3 = vadd.f32 %v3579_v63, %v3578_v55  ;;  %v4073_v55 = vld [vmem:[#allocation20 + $0x20] sm:$0xff]   ;;  %v4074_v63 = vld [vmem:[#allocation20 + $0x18] sm:$0xff]  }
 0x791   : > { %v3581_v4 = vpop.f32.mrf.mxu1 }
 0x792   : > { %v2662_v5 = vadd.f32 %v3580_v3, %v2621_v1  ;;  %v3479_v1 = vld [vmem:[%s5199_s27] ss:$0 sm:$0xff]  ;;  %s4364_s27 = scalar_lea.vmem %s5069_s20, 256 }
 0x793   : > { %v3582_v6 = vpop.f32.mrf.mxu1  ;;  %p4365_p1 = scmp.ne.s32.totalorder %s5069_s20, %s4364_s27  ;;  %p4372_p0 = scmp.lt.s32.totalorder %s4370_s0, %s4364_s27 }
 0x794   : > { %v3583_v8 = vadd.f32 %v3582_v6, %v3581_v4  ;;  %v5003_v9 = vadd.f32 %v2662_v5, %v4850_v19  ;;  %v4055_v19 = vld [vmem:[#allocation17 + $0x30] sm:$0xff]  }
 0x795   : > { %3662 = vmatpush3.bf16.msra.mxu0 %v4055_v19  ;;  %p4366_p3 = pnand %p4365_p1, %p4751_p8  ;;  %p4373_p13 = por %p4372_p0, %p4371_p12 }
 0x796   : > { %v2665_v10 = vadd.f32 %v3583_v8, %v2624_v7  ;;  %2672 = vadd.xlane.f32.xlu0 %v5003_v9  ;;  %v2678_v41 = vmul.f32 %v5003_v9, %v5003_v9  ;;  %3663 = vmatprep.subr.bf16.mxu0 %v4485_v32 }
 0x797   : > { %p4367_p6 = pneg %p4366_p3 }
 0x798   : > { %v5007_v59 = vadd.f32 %v2665_v10, %v4853_v20  ;;  %v4056_v20 = vld [vmem:[#allocation17 + $0x28] sm:$0xff]  }
 0x799   : > { %3664 = vmatpush3.bf16.msra.mxu0 %v4056_v20  ;;  %p4374_p5 = pnand %p4373_p13, %p4367_p6 }
 0x79a   : > { %2674 = vadd.xlane.f32.xlu1 %v5007_v59  ;;  %2680 = vadd.xlane.f32.xlu0 %v2678_v41  ;;  %v2679_v61 = vmul.f32 %v5007_v59, %v5007_v59  ;;  %v4076_v41 = vld [vmem:[#allocation20 + $0x8] sm:$0xff]  }
 0x79b   : > { %3665 = vmatprep.subr.bf16.mxu0 %v4485_v32 }
 0x79d   : > { %3666 = vmatpush3.bf16.msra.mxu0 %v4057_v13 }
 0x79e   : > { %2682 = vadd.xlane.f32.xlu1 %v2679_v61  ;;  %3667 = vmatprep.subr.bf16.mxu0 %v4485_v32  ;;  %v4077_v61 = vld [vmem:[#allocation20] sm:$0xff]  }
 0x7a1   : > { %3668 = vmatpush3.bf16.msra.mxu0 %v4058_v12 }
 0x7a2   : > { %3669 = vmatprep.subr.bf16.mxu0 %v4485_v32 }
 0x7a5   : > { %3670 = vmatpush3.bf16.msra.mxu0 %v4059_v14 }
 0x7a6   : > { %3671 = vmatprep.subr.bf16.mxu0 %v4485_v32 }
 0x7a9   : > { %3672 = vmatpush3.bf16.msra.mxu0 %v4060_v15 }
 0x7aa   : > { %3673 = vmatprep.subr.bf16.mxu0 %v4485_v32 }
 0x7ad   : > { %3674 = vmatpush3.bf16.msra.mxu0 %v4061_v16 }
 0x7ae   : > { %3699 = vmatprep.subr.bf16.mxu0 %v4485_v32 }
 0x81f   : > { %v2673_v23 = vpop.xlane.xlu0 %2672 }
 0x820   : > { %v2676_v24 = vmul.f32 0.03125, %v2673_v23 }
 0x822   : > { %v2686_v27 = vmul.f32 %v2676_v24, %v2676_v24  ;;  %v2692_v40 = vsub.f32 %v5003_v9, %v2676_v24 }
 0x823   : > { %v2675_v25 = vpop.xlane.xlu1 %2674  ;;  %v2681_v26 = vpop.xlane.xlu0 %2680 }
 0x824   : > { %v2677_v28 = vmul.f32 0.03125, %v2675_v25  ;;  %v2684_v29 = vmul.f32 0.03125, %v2681_v26 }
 0x826   : > { %v2688_v30 = vsub.f32 %v2684_v29, %v2686_v27  ;;  %v2687_v33 = vmul.f32 %v2677_v28, %v2677_v28  ;;  %v2693_v43 = vsub.f32 %v5007_v59, %v2677_v28  ;;  %v4075_v59 = vld [vmem:[#allocation20 + $0x10] sm:$0xff]  }
 0x827   : > { %v2683_v31 = vpop.xlane.xlu1 %2682 }
 0x828   : > { %v2690_v18 = vmax.f32 %v2688_v30, 0.0  ;;  %v2685_v34 = vmul.f32 0.03125, %v2683_v31 }
 0x82a   : > { %v2694_v0 = vadd.f32 1e-05, %v2690_v18  ;;  %v2689_v35 = vsub.f32 %v2685_v34, %v2687_v33 }
 0x82c   : > { %4110 = vrsqrt.f32 %v2694_v0  ;;  %v2691_v36 = vmax.f32 %v2689_v35, 0.0 }
 0x82e   : > { %v2695_v37 = vadd.f32 1e-05, %v2691_v36 }
 0x830   : > { %4112 = vrsqrt.f32 %v2695_v37 }
 0x839   : > { %v4111_v44 = vpop.eup %4110 }
 0x83a   : > { %v2698_v45 = vmul.f32 %v4111_v44, %v2692_v40 }
 0x83c   : > { %v2706_v49 = vmul.f32 %v3477_v46, %v2698_v45 }
 0x83d   : > { %v4113_v47 = vpop.eup %4112 }
 0x83e   : > { %v2699_v48 = vmul.f32 %v4113_v47, %v2693_v43  ;;  %v2714_v54 = vadd.f32 %v3478_v51, %v2706_v49  ;;  %v3506_v49 = vld [vmem:[%s5202_s18] ss:$0 sm:$0xff] }
 0x840   : > { %v2707_v53 = vmul.f32 %v3477_v46, %v2699_v48 }
 0x842   : > { %v2715_v42 = vadd.f32 %v3478_v51, %v2707_v53  ;;  %v3507_v53 = vld [vmem:[%s5203_s23] ss:$0 sm:$0xff] }
 0x844   : > { %v2716_v60 = vpack.c.bf16 %v2715_v42, %v2714_v54 }
 0x846   : > { %3676 = vmatmul.mubr.bf16.vlgmr.msra.gmra.mxu0 %v2716_v60 }
 0x847   : > { %3715 = vmatprep.mubr.msk.bf16.mxu0 %vm4486_vm0, %v4485_v32  ;;  %3700 = vmatpush3.bf16.msra.mxu0 %v4070_v58 }
 0x848   : > { %3701 = vmatprep.subr.bf16.mxu0 %v4485_v32 }
 0x84b   : > { %3702 = vmatpush3.bf16.msra.mxu0 %v4071_v50 }
 0x84c   : > { %3703 = vmatprep.subr.bf16.mxu0 %v4485_v32 }
 0x84f   : > { %3704 = vmatpush3.bf16.msra.mxu0 %v4072_v52 }
 0x850   : > { %3705 = vmatprep.subr.bf16.mxu0 %v4485_v32 }
 0x853   : > { %3706 = vmatpush3.bf16.msra.mxu0 %v4073_v55 }
 0x854   : > { %3707 = vmatprep.subr.bf16.mxu0 %v4485_v32 }
 0x857   : > { %3708 = vmatpush3.bf16.msra.mxu0 %v4074_v63 }
 0x858   : > { %3709 = vmatprep.subr.bf16.mxu0 %v4485_v32 }
 0x85b   : > { %3710 = vmatpush3.bf16.msra.mxu0 %v4075_v59 }
 0x85c   : > { %3711 = vmatprep.subr.bf16.mxu0 %v4485_v32 }
 0x85f   : > { %3712 = vmatpush3.bf16.msra.mxu0 %v4076_v41 }
 0x860   : > { %3713 = vmatprep.subr.bf16.mxu0 %v4485_v32  ;;  %v3497_v32 = vld [vmem:[%s5201_s2] ss:$0 sm:$0xff] }
 0x863   : > { %3714 = vmatpush3.bf16.msra.mxu0 %v4077_v61 }
 0x906   : > { %v2822_v2 = vpop.f32.mrf.mxu0 }
 0x907   : > { %v2823_v4 = vadd.f32 %v3479_v1, %v2822_v2 }
 0x908   : > { %v3677_v3 = vpop.f32.mrf.mxu0 }
 0x909   : > { %v2829_v8 = vmax.f32 %v2823_v4, 0.0 }
 0x90a   : > { %v2825_v5 = vpop.f32.mrf.mxu0 }
 0x90b   : > { %v2826_v6 = vadd.f32 %v3479_v1, %v2825_v5 }
 0x90c   : > { %v3678_v7 = vpop.f32.mrf.mxu0 }
 0x90d   : > { %v2830_v9 = vmax.f32 %v2826_v6, 0.0 }
 0x90f   : > { %v2831_v10 = vpack.c.bf16 %v2830_v9, %v2829_v8 }
 0x911   : > { %3696 = vmatmul.mubr.bf16.vlgmr.msra.gmra.mxu1 %v2831_v10 }
 0x9d1   : > { %v2937_v19 = vpop.f32.mrf.mxu1 }
 0x9d2   : > { %v2938_v13 = vadd.f32 %v3488_v11, %v2937_v19 }
 0x9d3   : > { %v3697_v20 = vpop.f32.mrf.mxu1 }
 0x9d4   : > { %v2944_v16 = vmax.f32 %v2938_v13, 0.0 }
 0x9d5   : > { %v2940_v12 = vpop.f32.mrf.mxu1 }
 0x9d6   : > { %v2941_v14 = vadd.f32 %v3488_v11, %v2940_v12 }
 0x9d7   : > { %v3698_v15 = vpop.f32.mrf.mxu1 }
 0x9d8   : > { %v2945_v17 = vmax.f32 %v2941_v14, 0.0 }
 0x9da   : > { %v2946_v39 = vpack.c.bf16 %v2945_v17, %v2944_v16 }
 0x9dc   : > { %3716 = vmatmul.mubr.bf16.vlgmr.msra.gmra.mxu0 %v2946_v39 }
 0xa9c   : > { %v3052_v21 = vpop.f32.mrf.mxu0 }
 0xa9d   : > { %v3053_v38 = vadd.f32 %v3497_v32, %v3052_v21 }
 0xa9e   : > { %v3717_v22 = vpop.f32.mrf.mxu0 }
 0xa9f   : > { %3061 = vadd.xlane.f32.xlu0 %v3053_v38  ;;  %v3067_v25 = vmul.f32 %v3053_v38, %v3053_v38 }
 0xaa0   : > { %v3055_v23 = vpop.f32.mrf.mxu0 }
 0xaa1   : > { %v3056_v24 = vadd.f32 %v3497_v32, %v3055_v23 }
 0xaa2   : > { %v3718_v26 = vpop.f32.mrf.mxu0 }
 0xaa3   : > { %3069 = vadd.xlane.f32.xlu0 %v3067_v25  ;;  %3063 = vadd.xlane.f32.xlu1 %v3056_v24  ;;  %v3068_v27 = vmul.f32 %v3056_v24, %v3056_v24 }
 0xaa7   : > { %3071 = vadd.xlane.f32.xlu1 %v3068_v27 }
 0xb28   : > { %v3062_v28 = vpop.xlane.xlu0 %3061 }
 0xb29   : > { %v3065_v29 = vmul.f32 0.03125, %v3062_v28 }
 0xb2b   : > { %v3075_v33 = vmul.f32 %v3065_v29, %v3065_v29  ;;  %v3081_v47 = vsub.f32 %v3053_v38, %v3065_v29 }
 0xb2c   : > { %v3070_v30 = vpop.xlane.xlu0 %3069  ;;  %v3064_v31 = vpop.xlane.xlu1 %3063 }
 0xb2d   : > { %v3073_v18 = vmul.f32 0.03125, %v3070_v30  ;;  %v3066_v34 = vmul.f32 0.03125, %v3064_v31 }
 0xb2f   : > { %v3077_v0 = vsub.f32 %v3073_v18, %v3075_v33  ;;  %v3076_v37 = vmul.f32 %v3066_v34, %v3066_v34  ;;  %v3082_v42 = vsub.f32 %v3056_v24, %v3066_v34 }
 0xb30   : > { %v3072_v35 = vpop.xlane.xlu1 %3071 }
 0xb31   : > { %v3079_v36 = vmax.f32 %v3077_v0, 0.0  ;;  %v3074_v40 = vmul.f32 0.03125, %v3072_v35 }
 0xb33   : > { %v3083_v44 = vadd.f32 1e-05, %v3079_v36  ;;  %v3078_v45 = vsub.f32 %v3074_v40, %v3076_v37 }
 0xb35   : > { %4114 = vrsqrt.f32 %v3083_v44  ;;  %v3080_v46 = vmax.f32 %v3078_v45, 0.0 }
 0xb37   : > { %v3084_v43 = vadd.f32 1e-05, %v3080_v46 }
 0xb39   : > { %4116 = vrsqrt.f32 %v3084_v43 }
 0xb42   : > { %v4115_v48 = vpop.eup %4114 }
 0xb43   : > { %v3087_v51 = vmul.f32 %v4115_v48, %v3081_v47 }
 0xb45   : > { %v3095_v54 = vmul.f32 %v3506_v49, %v3087_v51 }
 0xb46   : > { %v4117_v60 = vpop.eup %4116 }
 0xb47   : > { %v3088_v62 = vmul.f32 %v4117_v60, %v3082_v42  ;;  %v3103_v56 = vadd.f32 %v3507_v53, %v3095_v54 }
 0xb49   : > { %v3096_v57 = vmul.f32 %v3506_v49, %v3088_v62  ;;  %3105 = vst [vmem:[%s811_s1] sm:$0xff] %v3103_v56 }
 0xb4b   : > { %v3104_v58 = vadd.f32 %v3507_v53, %v3096_v57 }
 0xb4d   : > { %3106 = vst [vmem:[%s811_s1 + $0x8] sm:$0xff] %v3104_v58 }
 0xb4e   : > { %4377 = shalt.err (!%p4374_p5)
}
 0xb4f   : > { %s4378_s16 = scalar_lea.hbm %s5067_s17, 256  ;;  %s4382_s19 = scalar_lea.hbm %s5204_s13, 512 }
 0xb50   : > { %p4379_p4 = scmp.ne.s32.totalorder %s5067_s17, %s4378_s16  ;;  %p4383_p10 = scmp.lt.s32.totalorder %s5067_s17, %s5204_s13 }
 0xb51   : > { %p4384_p11 = scmp.lt.s32.totalorder %s4382_s19, %s4378_s16 }
 0xb52   : > { %p4380_p9 = pnand %p4379_p4, %p4751_p8 }
 0xb53   : > { %p4385_p1 = por %p4384_p11, %p4383_p10 }
 0xb54   : > { %p4381_p2 = pneg %p4380_p9 }
 0xb56   : > { %p4386_p3 = pnand %p4385_p1, %p4381_p2 }
 0xb58   : > { %4389 = shalt.err (!%p4386_p3)
}
 0xb59   : > { %s4488_s5 = smov 128   ;;  %s4489_s18 = smov 8  }
 0xb5a   : > { %3751 = dma.vmem_to_hbm [thread:$0]  (%p4751_p8), %s5069_s20, 256, %s5067_s17, %s3108_s28, %s4488_s5, %s4488_s5, %s4489_s18  }
 0xb5b PF: > { %s5205_s21 = sld [smem:[#allocation30_spill]] }
 0xb5c   : > { %s5207_s23 = sld [smem:[#allocation32_spill]] }
 0xb61   : > { %s3138_s9 = sand.u32 1, %s5205_s21  }
 0xb62   : > { %p5208_p6 = scmp.ge.s32.totalorder %s5207_s23, 2  ;;  %s3139_s1 = scalar_lea.sflag [#allocation8], %s3138_s9 }
 0xb64   : > { %p3783_p12 = pnand %p5208_p6, %p4759_p7 }
 0xb66   : > { %p3784_p0 = pneg %p3783_p12 }
 0xb68   : > { %4441 = dma.done.wait (%p3784_p0), %s3139_s1, 256  }
 0xb69   : > { %4443 = vsyncadd (%p3784_p0), %s3139_s1, 4294967040  ;;  %s47_s0 = sadd.s32 1, %s5207_s23   ;;  %s5209_s22 = sld [smem:[#allocation31_spill]] }
 0xb6a   : > { %p44_p13 = scmp.ge.s32.totalorder %s47_s0, 4   ;;  %s5210_s28 = sld [smem:[#allocation34_spill]] }
 0xb6b   : > { %s5211_s12 = sld [smem:[#allocation33_spill]]  ;;  %s5212_s27 = smov %s4450_s3 }
 0xb6c   : > { %s5214_s29 = smov %s4462_s14 }
 0xb6d   :  { %46 = sbr.rel (!%p44_p13) target bundleno = 40 (0x28), region = 190 }
 0xb6f   : > { %s5213_s3 = smov %s5209_s22 }
 0xb71   : > { %s5215_s14 = smov %s5211_s12 }
 0xb72   :  { %3144 = vsyncpa [#allocation7], 1 }
 0xb73   :  { %3146 = vsyncpa [#allocation7 + $0x1], 1 }
 0xb74   :  { %3147 = vsyncpa [#allocation10], 1 }
 0xb75   :  { %3149 = vsyncpa [#allocation10 + $0x1], 1 }
 0xb76   :  { %3150 = vsyncpa [#allocation13], 1 }
 0xb77   :  { %3151 = vsyncpa [#allocation16], 1 }
 0xb78   :  { %3152 = vsyncpa [#allocation19], 1 }
 0xb79   :  { %3153 = vsyncpa [#allocation8], 1 }
 0xb7a   :  { %3155 = vsyncpa [#allocation8 + $0x1], 1 }

</bundles_post_ra>
